<compile_context>
chip_gen: v5e
topology: v5e:2x2
jax: 0.10.0
libtpu: 0.0.40
codegen_flags: <defaults>
</compile_context>

<pallas_src>
import functools

import jax
import jax.numpy as jnp
from jax.experimental import pallas as pl
from jax.experimental.pallas import tpu as pltpu

nClasses = 10
HPAD = 128  # lane-aligned padded width for hidden (100) and output (10)


def mlp_kernel(x_ref, w1_ref, b1_ref, w2_ref, b2_ref, w3_ref, b3_ref, o_ref):
    # Per batch tile: (TM,D)@(D,128) -> tanh -> (TM,128)@(128,128) -> tanh
    #                 -> (TM,128)@(128,128) + bias.  Padded columns stay exactly 0.
    x = x_ref[...]
    h1 = jnp.tanh(
        jnp.dot(x, w1_ref[...], preferred_element_type=jnp.float32) + b1_ref[...]
    )
    h2 = jnp.tanh(
        jnp.dot(h1, w2_ref[...], preferred_element_type=jnp.float32) + b2_ref[...]
    )
    o_ref[...] = (
        jnp.dot(h2, w3_ref[...], preferred_element_type=jnp.float32) + b3_ref[...]
    )


def _round_up(n, m):
    return ((n + m - 1) // m) * m


def _cdiv(a, b):
    return -(-a // b)


def _pad2d(a, rows, cols):
    return jnp.pad(a, ((0, rows - a.shape[0]), (0, cols - a.shape[1])))


def prepare_params(params, *, nc=3, sz=32):
    """One-time prep: PyTorch (out, in) weights -> (in, out), zero-padded to 128-wide.

    Do this once at parameter load time, NOT per forward call.
    """
    D = nc * sz * sz
    return {
        "w1": _pad2d(params["w1"].T, D, HPAD),        # (D, 128)
        "b1": _pad2d(params["b1"].reshape(1, -1), 1, HPAD),
        "w2": _pad2d(params["w2"].T, HPAD, HPAD),     # (128, 128)
        "b2": _pad2d(params["b2"].reshape(1, -1), 1, HPAD),
        "w3": _pad2d(params["w3"].T, HPAD, HPAD),     # (128, 128)
        "b3": _pad2d(params["b3"].reshape(1, -1), 1, HPAD),
    }


def _vmem_budget():
    """Per-generation knobs (trace-time): (batch-tile cap, vmem_limit_bytes)."""
    try:
        cap = int(getattr(pltpu.get_tpu_info(), "vmem_capacity_bytes",
                          64 * 1024 * 1024))
    except Exception:
        cap = 64 * 1024 * 1024                  # conservative: v7x physical VMEM
    if cap >= 128 * 1024 * 1024:                # v5e / v6e (128 MiB VMEM)
        return 2048, 96 * 1024 * 1024
    return 1024, 48 * 1024 * 1024               # v7x (64 MiB VMEM)


def _choose_tiling(B, D, tm_gen_cap, vmem_limit):
    """Pick (TM, n_tiles): tiny batch padding, >=2 grid steps, VMEM-safe tile."""
    # Resident params are single-buffered in VMEM; x and out are double-buffered.
    weight_bytes = (D + 2 * HPAD + 3) * HPAD * 4
    per_row_bytes = 2 * (D + HPAD) * 4
    tm_cap = (vmem_limit * 3 // 4 - weight_bytes) // per_row_bytes
    tm_cap = max(8, min(tm_gen_cap, (tm_cap // 8) * 8))

    B8 = _round_up(B, 8)                         # sublane alignment only
    min_tiles = 2 if B8 >= 16 else 1             # keep both v7x TensorCores busy
    n_tiles = max(min_tiles, _cdiv(B8, tm_cap))
    TM = min(tm_cap, _round_up(_cdiv(B8, n_tiles), 8))
    n_tiles = _cdiv(B8, TM)
    return TM, n_tiles


@functools.partial(jax.jit, static_argnames=("nc", "sz"))
def mlp_forward(x_nchw, prepped, *, nc=3, sz=32):
    """x_nchw: (B, nc, sz, sz) f32.  prepped: output of prepare_params()."""
    B = x_nchw.shape[0]
    D = nc * sz * sz
    x = x_nchw.reshape(B, D)  # same row-major flatten as torch .view()

    tm_gen_cap, vmem_limit = _vmem_budget()
    TM, n_tiles = _choose_tiling(B, D, tm_gen_cap, vmem_limit)
    B_pad = TM * n_tiles
    if B_pad != B:
        x = jnp.pad(x, ((0, B_pad - B), (0, 0)))  # at most one tile (+8 rows) of slack

    # Whole-array VMEM residents: single copy, no per-step double-buffering.
    resident = pl.BlockSpec(memory_space=pltpu.MemorySpace.VMEM)

    out = pl.pallas_call(
        mlp_kernel,
        out_shape=jax.ShapeDtypeStruct((B_pad, HPAD), jnp.float32),
        grid=(n_tiles,),
        in_specs=[
            pl.BlockSpec((TM, D), lambda i: (i, 0)),   # x: streamed per batch tile
            resident,  # w1
            resident,  # b1
            resident,  # w2
            resident,  # b2
            resident,  # w3
            resident,  # b3
        ],
        out_specs=pl.BlockSpec((TM, HPAD), lambda i: (i, 0)),  # lane-dense 128-wide store
        compiler_params=pltpu.CompilerParams(
            dimension_semantics=("parallel",),
            vmem_limit_bytes=vmem_limit,
        ),
    )(
        x,
        prepped["w1"], prepped["b1"],
        prepped["w2"], prepped["b2"],
        prepped["w3"], prepped["b3"],
    )

    return out[:B, :nClasses]


def init_params(key, nc=3, sz=32):
    """Deterministic synthetic parameters with PyTorch Linear shapes."""
    D = nc * sz * sz
    ks = jax.random.split(key, 6)

    def uniform(k, shape, fan_in):
        bound = 1.0 / jnp.sqrt(fan_in)
        return jax.random.uniform(k, shape, jnp.float32, -bound, bound)

    return {
        "w1": uniform(ks[0], (100, D), D),
        "b1": uniform(ks[1], (100,), D),
        "w2": uniform(ks[2], (100, 100), 100),
        "b2": uniform(ks[3], (100,), 100),
        "w3": uniform(ks[4], (nClasses, 100), 100),
        "b3": uniform(ks[5], (nClasses,), 100),
    }


def _ref_forward(x, params):
    xf = x.reshape(x.shape[0], -1)
    h1 = jnp.tanh(xf @ params["w1"].T + params["b1"])
    h2 = jnp.tanh(h1 @ params["w2"].T + params["b2"])
    return h2 @ params["w3"].T + params["b3"]


if __name__ == "__main__":
    nc, sz = 3, 32
    key = jax.random.PRNGKey(0)
    k_x1, k_x2, k_p = jax.random.split(key, 3)

    params = init_params(k_p, nc=nc, sz=sz)
    # One-time weight transpose + lane padding (not in the per-call path).
    prepped = jax.tree_util.tree_map(
        jax.block_until_ready, prepare_params(params, nc=nc, sz=sz)
    )

    # Small batch (single-tile path).
    x1 = jax.random.normal(k_x1, (2, nc, sz, sz), jnp.float32)
    out1 = jax.block_until_ready(mlp_forward(x1, prepped, nc=nc, sz=sz))
    ref1 = _ref_forward(x1, params)
    assert out1.shape == (2, nClasses)
    assert jnp.allclose(out1, ref1, atol=2e-5, rtol=1e-5)

    # Non-multiple batch (exercises the >=2-tile, tiny-padding path).
    x2 = jax.random.normal(k_x2, (50, nc, sz, sz), jnp.float32)
    out2 = jax.block_until_ready(mlp_forward(x2, prepped, nc=nc, sz=sz))
    ref2 = _ref_forward(x2, params)
    assert out2.shape == (50, nClasses)
    assert jnp.allclose(out2, ref2, atol=2e-5, rtol=1e-5)

    print("KERNEL_OK")
</pallas_src>

<mosaic_0001>
module attributes {stable_mosaic.version = 11 : i64} {
  func.func @mlp_kernel(%arg0: i32, %arg1: memref<8x3072xf32, #tpu.memory_space<vmem>>, %arg2: memref<3072x128xf32, #tpu.memory_space<vmem>>, %arg3: memref<1x128xf32, #tpu.memory_space<vmem>>, %arg4: memref<128x128xf32, #tpu.memory_space<vmem>>, %arg5: memref<1x128xf32, #tpu.memory_space<vmem>>, %arg6: memref<128x128xf32, #tpu.memory_space<vmem>>, %arg7: memref<1x128xf32, #tpu.memory_space<vmem>>, %arg8: memref<8x128xf32, #tpu.memory_space<vmem>>) attributes {dimension_semantics = [#tpu.dimension_semantics<parallel>], iteration_bounds = array<i64: 1>, scalar_prefetch = 0 : i64, scratch_operands = 0 : i64, tpu.core_type = #tpu.core_type<tc>, window_params = [{transform_indices = @transform_0, window_bounds = array<i64: 8, 3072>}, {pipeline_mode = #tpu.pipeline_mode<synchronous>, transform_indices = @transform_1, window_bounds = array<i64: 3072, 128>}, {pipeline_mode = #tpu.pipeline_mode<synchronous>, transform_indices = @transform_2, window_bounds = array<i64: 1, 128>}, {pipeline_mode = #tpu.pipeline_mode<synchronous>, transform_indices = @transform_3, window_bounds = array<i64: 128, 128>}, {pipeline_mode = #tpu.pipeline_mode<synchronous>, transform_indices = @transform_4, window_bounds = array<i64: 1, 128>}, {pipeline_mode = #tpu.pipeline_mode<synchronous>, transform_indices = @transform_5, window_bounds = array<i64: 128, 128>}, {pipeline_mode = #tpu.pipeline_mode<synchronous>, transform_indices = @transform_6, window_bounds = array<i64: 1, 128>}, {transform_indices = @transform_7, window_bounds = array<i64: 8, 128>}]} {
    %c0 = arith.constant 0 : index
    %c0_0 = arith.constant 0 : index
    %0 = vector.load %arg1[%c0, %c0_0] : memref<8x3072xf32, #tpu.memory_space<vmem>>, vector<8x3072xf32>
    %c0_1 = arith.constant 0 : index
    %c0_2 = arith.constant 0 : index
    %1 = vector.load %arg2[%c0_1, %c0_2] : memref<3072x128xf32, #tpu.memory_space<vmem>>, vector<3072x128xf32>
    %cst = arith.constant dense<0.000000e+00> : vector<8x128xf32>
    %2 = tpu.matmul %0, %1, %cst {dimension_numbers = #tpu.dot_dimension_numbers<[1], [0], [0], [1], [0, 0, 1, 1], [], []>} : vector<8x3072xf32>, vector<3072x128xf32>, vector<8x128xf32> -> vector<8x128xf32>
    %c0_3 = arith.constant 0 : index
    %c0_4 = arith.constant 0 : index
    %3 = vector.load %arg3[%c0_3, %c0_4] : memref<1x128xf32, #tpu.memory_space<vmem>>, vector<1x128xf32>
    %4 = vector.broadcast %3 : vector<1x128xf32> to vector<8x128xf32>
    %5 = arith.addf %2, %4 : vector<8x128xf32>
    %6 = math.tanh %5 : vector<8x128xf32>
    %c0_5 = arith.constant 0 : index
    %c0_6 = arith.constant 0 : index
    %7 = vector.load %arg4[%c0_5, %c0_6] : memref<128x128xf32, #tpu.memory_space<vmem>>, vector<128x128xf32>
    %cst_7 = arith.constant dense<0.000000e+00> : vector<8x128xf32>
    %8 = tpu.matmul %6, %7, %cst_7 {dimension_numbers = #tpu.dot_dimension_numbers<[1], [0], [0], [1], [0, 0, 1, 1], [], []>} : vector<8x128xf32>, vector<128x128xf32>, vector<8x128xf32> -> vector<8x128xf32>
    %c0_8 = arith.constant 0 : index
    %c0_9 = arith.constant 0 : index
    %9 = vector.load %arg5[%c0_8, %c0_9] : memref<1x128xf32, #tpu.memory_space<vmem>>, vector<1x128xf32>
    %10 = vector.broadcast %9 : vector<1x128xf32> to vector<8x128xf32>
    %11 = arith.addf %8, %10 : vector<8x128xf32>
    %12 = math.tanh %11 : vector<8x128xf32>
    %c0_10 = arith.constant 0 : index
    %c0_11 = arith.constant 0 : index
    %13 = vector.load %arg6[%c0_10, %c0_11] : memref<128x128xf32, #tpu.memory_space<vmem>>, vector<128x128xf32>
    %cst_12 = arith.constant dense<0.000000e+00> : vector<8x128xf32>
    %14 = tpu.matmul %12, %13, %cst_12 {dimension_numbers = #tpu.dot_dimension_numbers<[1], [0], [0], [1], [0, 0, 1, 1], [], []>} : vector<8x128xf32>, vector<128x128xf32>, vector<8x128xf32> -> vector<8x128xf32>
    %c0_13 = arith.constant 0 : index
    %c0_14 = arith.constant 0 : index
    %15 = vector.load %arg7[%c0_13, %c0_14] : memref<1x128xf32, #tpu.memory_space<vmem>>, vector<1x128xf32>
    %16 = vector.broadcast %15 : vector<1x128xf32> to vector<8x128xf32>
    %17 = arith.addf %14, %16 : vector<8x128xf32>
    %c0_15 = arith.constant 0 : index
    %c0_16 = arith.constant 0 : index
    %18 = vector.load %arg8[%c0_15, %c0_16] : memref<8x128xf32, #tpu.memory_space<vmem>>, vector<8x128xf32>
    tpu.vector_store %arg8[%c0_15, %c0_16], %17 {strides = array<i32>} : memref<8x128xf32, #tpu.memory_space<vmem>>, vector<8x128xf32>,
    return
  }
  func.func @transform_0(%arg0: i32) -> (i32, i32) {
    %c0_i32 = arith.constant 0 : i32
    %c0_i32_0 = arith.constant 0 : i32
    return %arg0, %c0_i32 : i32, i32
  }
  func.func @transform_1(%arg0: i32) -> (i32, i32) {
    %c0_i32 = arith.constant 0 : i32
    %c0_i32_0 = arith.constant 0 : i32
    %c0_i32_1 = arith.constant 0 : i32
    return %c0_i32, %c0_i32_0 : i32, i32
  }
  func.func @transform_2(%arg0: i32) -> (i32, i32) {
    %c0_i32 = arith.constant 0 : i32
    %c0_i32_0 = arith.constant 0 : i32
    %c0_i32_1 = arith.constant 0 : i32
    return %c0_i32, %c0_i32_0 : i32, i32
  }
  func.func @transform_3(%arg0: i32) -> (i32, i32) {
    %c0_i32 = arith.constant 0 : i32
    %c0_i32_0 = arith.constant 0 : i32
    %c0_i32_1 = arith.constant 0 : i32
    return %c0_i32, %c0_i32_0 : i32, i32
  }
  func.func @transform_4(%arg0: i32) -> (i32, i32) {
    %c0_i32 = arith.constant 0 : i32
    %c0_i32_0 = arith.constant 0 : i32
    %c0_i32_1 = arith.constant 0 : i32
    return %c0_i32, %c0_i32_0 : i32, i32
  }
  func.func @transform_5(%arg0: i32) -> (i32, i32) {
    %c0_i32 = arith.constant 0 : i32
    %c0_i32_0 = arith.constant 0 : i32
    %c0_i32_1 = arith.constant 0 : i32
    return %c0_i32, %c0_i32_0 : i32, i32
  }
  func.func @transform_6(%arg0: i32) -> (i32, i32) {
    %c0_i32 = arith.constant 0 : i32
    %c0_i32_0 = arith.constant 0 : i32
    %c0_i32_1 = arith.constant 0 : i32
    return %c0_i32, %c0_i32_0 : i32, i32
  }
  func.func @transform_7(%arg0: i32) -> (i32, i32) {
    %c0_i32 = arith.constant 0 : i32
    %c0_i32_0 = arith.constant 0 : i32
    return %arg0, %c0_i32 : i32, i32
  }
}

</mosaic_0001>

<bundles_post_ra>
// kernel: mlp_forward.1
= control target key start
LH: loop header
LB: loop body
LE: loop exit
PB: predicated region body
PF: predicated region fallthrough
CT: control target
= control target key end

     0   :  { %12 = vsyncpa [#allocation3], 0  ;;  %s1405_s0 = inlined_call_operand.vmem [shape: f32[8,3072], index: 0, kind: input, shape index: {}]   ;;  %s1406_s1 = inlined_call_operand.hbm [shape: f32[3072,128], index: 1, kind: input, shape index: {}]   ;;  %s1407_s2 = inlined_call_operand.hbm [shape: f32[1,128], index: 2, kind: input, shape index: {}]   ;;  %s1408_s3 = inlined_call_operand.hbm [shape: f32[128,128], index: 3, kind: input, shape index: {}]   ;;  %s1409_s4 = inlined_call_operand.hbm [shape: f32[1,128], index: 4, kind: input, shape index: {}]   ;;  %s1410_s5 = inlined_call_operand.hbm [shape: f32[128,128], index: 5, kind: input, shape index: {}]   ;;  %s1411_s6 = inlined_call_operand.hbm [shape: f32[1,128], index: 6, kind: input, shape index: {}]   ;;  %s1412_s7 = inlined_call_operand.vmem [shape: f32[8,128], index: 7, kind: output, shape index: {}]  }
   0x1   :  { %13 = vsyncpa [#allocation5], 0 }
   0x2   :  { %14 = vsyncpa [#allocation8], 0  ;;  %s36_s26 = sshll.u32 %s1407_s2, 4  ;;  %s37_s26 = int_to_ptr.hbm [resolvable:$true] %s36_s26 }
   0x3   :  { %15 = vsyncpa [#allocation11], 0  ;;  %s1264_s27 = smov [#allocation4]   ;;  %s60_s8 = sshll.u32 %s1409_s4, 4  ;;  %s61_s8 = int_to_ptr.hbm [resolvable:$true] %s60_s8 }
   0x4   :  { %s38_s28 = sshll.u32 %s1264_s27, 4  ;;  %s1265_s9 = smov [#allocation7]   ;;  %s39_s28 = int_to_ptr.vmem [resolvable:$true] %s38_s28 }
   0x5   :  { %41 = dma.hbm_to_vmem [thread:$0]  %s37_s26, 16, %s39_s28, [#allocation5]  }
   0x6   :  { %s62_s10 = sshll.u32 %s1265_s9, 4  ;;  %s22_s13 = sshll.u32 %s1406_s1, 4  ;;  %s63_s10 = int_to_ptr.vmem [resolvable:$true] %s62_s10  ;;  %s23_s13 = int_to_ptr.hbm [resolvable:$true] %s22_s13 }
   0x7   :  { %65 = dma.hbm_to_vmem [thread:$0]  %s61_s8, 16, %s63_s10, [#allocation8]  }
   0x8   :  { %s1266_s2 = smov [#allocation2]   ;;  %s46_s17 = sshll.u32 %s1408_s3, 4  ;;  %s47_s17 = int_to_ptr.hbm [resolvable:$true] %s46_s17 }
   0x9   :  { %s24_s14 = sshll.u32 %s1266_s2, 4  ;;  %s1267_s18 = smov 128   ;;  %s25_s14 = int_to_ptr.vmem [resolvable:$true] %s24_s14 }
   0xa   :  { %s1268_s4 = smov 8   ;;  %s1269_s19 = smov [#allocation6]  }
   0xb   :  { %30 = dma.hbm_to_vmem [thread:$0]  %s23_s13, 49152, %s25_s14, [#allocation3], %s1267_s18, %s1267_s18, %s1268_s4  }
   0xc   :  { %s48_s20 = sshll.u32 %s1269_s19, 4  ;;  %s70_s1 = sshll.u32 %s1410_s5, 4  ;;  %s49_s20 = int_to_ptr.vmem [resolvable:$true] %s48_s20  ;;  %s71_s1 = int_to_ptr.hbm [resolvable:$true] %s70_s1 }
   0xd   :  { %54 = dma.hbm_to_vmem [thread:$0]  %s47_s17, 2048, %s49_s20, [#allocation5], %s1267_s18, %s1267_s18, %s1268_s4  }
   0xe   :  { %s84_s25 = sshll.u32 %s1411_s6, 4  ;;  %s1270_s26 = smov [#allocation9]   ;;  %s85_s25 = int_to_ptr.hbm [resolvable:$true] %s84_s25 }
   0xf   :  { %s72_s27 = sshll.u32 %s1270_s26, 4  ;;  %s1271_s3 = smov [#allocation10]   ;;  %s73_s27 = int_to_ptr.vmem [resolvable:$true] %s72_s27 }
  0x10   :  { %78 = dma.hbm_to_vmem [thread:$0]  %s71_s1, 2048, %s73_s27, [#allocation8], %s1267_s18, %s1267_s18, %s1268_s4  }
  0x11   :  { %s86_s28 = sshll.u32 %s1271_s3, 4  ;;  %s87_s28 = int_to_ptr.vmem [resolvable:$true] %s86_s28 }
  0x12   :  { %89 = dma.hbm_to_vmem [thread:$0]  %s85_s25, 16, %s87_s28, [#allocation11]  }
  0x13   :  { %1256 = dma.done.wait [#allocation3], 49152  }
  0x14   :  { %1257 = vsyncadd [#allocation3], 4294918144 }
  0x15   :  { %1258 = dma.done.wait [#allocation5], 2064  }
  0x16   :  { %1259 = vsyncadd [#allocation5], 4294965232 }
  0x17   :  { %1260 = dma.done.wait [#allocation8], 2064  }
  0x18   :  { %1261 = vsyncadd [#allocation8], 4294965232 }
  0x19   :  { %1262 = dma.done.wait [#allocation11], 16  }
  0x1a   :  { %1263 = vsyncadd [#allocation11], 4294967280  ;;  %v153_v0 = vld [vmem:[#allocation2 + $0x78] sm:$0xff]  ;;  %v152_v2 = vld [vmem:[#allocation2 + $0x70] sm:$0xff] }
  0x1b   :  { %v185_v1 = vld [vmem:[#allocation2 + $0x178] sm:$0xff]  ;;  %526 = vmatpush.msra.mxu0 %v153_v0  ;;  %v184_v4 = vld [vmem:[#allocation2 + $0x170] sm:$0xff]  ;;  %v151_v6 = vld [vmem:[#allocation2 + $0x68] sm:$0xff] }
  0x1c   :  { %566 = vmatpush.msra.mxu2 %v185_v1  ;;  %v169_v3 = vld [vmem:[#allocation2 + $0xf8] sm:$0xff]  ;;  %v168_v7 = vld [vmem:[#allocation2 + $0xf0] sm:$0xff]  ;;  %v183_v8 = vld [vmem:[#allocation2 + $0x168] sm:$0xff] }
  0x1d   :  { %v201_v5 = vld [vmem:[#allocation2 + $0x1f8] sm:$0xff]  ;;  %546 = vmatpush.msra.mxu1 %v169_v3  ;;  %527 = vmatpush.msra.mxu0 %v152_v2  ;;  %v200_v9 = vld [vmem:[#allocation2 + $0x1f0] sm:$0xff]  ;;  %v167_v10 = vld [vmem:[#allocation2 + $0xe8] sm:$0xff] }
  0x1e   :  { %586 = vmatpush.msra.mxu3 %v201_v5  ;;  %567 = vmatpush.msra.mxu2 %v184_v4  ;;  %v150_v11 = vld [vmem:[#allocation2 + $0x60] sm:$0xff]  ;;  %v199_v13 = vld [vmem:[#allocation2 + $0x1e8] sm:$0xff]  ;;  %v149_v16 = vld [vmem:[#allocation2 + $0x58] sm:$0xff] }
  0x1f   :  { %547 = vmatpush.msra.mxu1 %v168_v7  ;;  %v182_v12 = vld [vmem:[#allocation2 + $0x160] sm:$0xff]  ;;  %528 = vmatpush.msra.mxu0 %v151_v6  ;;  %v181_v17 = vld [vmem:[#allocation2 + $0x158] sm:$0xff]  ;;  %v148_v20 = vld [vmem:[#allocation2 + $0x50] sm:$0xff] }
  0x20   :  { %587 = vmatpush.msra.mxu3 %v200_v9  ;;  %568 = vmatpush.msra.mxu2 %v183_v8  ;;  %v166_v14 = vld [vmem:[#allocation2 + $0xe0] sm:$0xff]  ;;  %v165_v18 = vld [vmem:[#allocation2 + $0xd8] sm:$0xff]  ;;  %v180_v21 = vld [vmem:[#allocation2 + $0x150] sm:$0xff] }
  0x21   :  { %v198_v15 = vld [vmem:[#allocation2 + $0x1e0] sm:$0xff]  ;;  %548 = vmatpush.msra.mxu1 %v167_v10  ;;  %529 = vmatpush.msra.mxu0 %v150_v11  ;;  %v197_v19 = vld [vmem:[#allocation2 + $0x1d8] sm:$0xff]  ;;  %v164_v22 = vld [vmem:[#allocation2 + $0xd0] sm:$0xff] }
  0x22   :  { %588 = vmatpush.msra.mxu3 %v199_v13  ;;  %569 = vmatpush.msra.mxu2 %v182_v12  ;;  %v196_v23 = vld [vmem:[#allocation2 + $0x1d0] sm:$0xff]  ;;  %v147_v24 = vld [vmem:[#allocation2 + $0x48] sm:$0xff]  ;;  %v146_v28 = vld [vmem:[#allocation2 + $0x40] sm:$0xff] }
  0x23   :  { %549 = vmatpush.msra.mxu1 %v166_v14  ;;  %530 = vmatpush.msra.mxu0 %v149_v16  ;;  %v179_v25 = vld [vmem:[#allocation2 + $0x148] sm:$0xff]  ;;  %v178_v29 = vld [vmem:[#allocation2 + $0x140] sm:$0xff]  ;;  %v145_v32 = vld [vmem:[#allocation2 + $0x38] sm:$0xff] }
  0x24   :  { %589 = vmatpush.msra.mxu3 %v198_v15  ;;  %570 = vmatpush.msra.mxu2 %v181_v17  ;;  %v163_v26 = vld [vmem:[#allocation2 + $0xc8] sm:$0xff]  ;;  %v162_v30 = vld [vmem:[#allocation2 + $0xc0] sm:$0xff]  ;;  %v177_v33 = vld [vmem:[#allocation2 + $0x138] sm:$0xff] }
  0x25   :  { %550 = vmatpush.msra.mxu1 %v165_v18  ;;  %531 = vmatpush.msra.mxu0 %v148_v20  ;;  %v195_v27 = vld [vmem:[#allocation2 + $0x1c8] sm:$0xff]  ;;  %v194_v31 = vld [vmem:[#allocation2 + $0x1c0] sm:$0xff]  ;;  %v161_v34 = vld [vmem:[#allocation2 + $0xb8] sm:$0xff] }
  0x26   :  { %590 = vmatpush.msra.mxu3 %v197_v19  ;;  %571 = vmatpush.msra.mxu2 %v180_v21  ;;  %v193_v35 = vld [vmem:[#allocation2 + $0x1b8] sm:$0xff]  ;;  %v144_v36 = vld [vmem:[#allocation2 + $0x30] sm:$0xff]  ;;  %v143_v40 = vld [vmem:[#allocation2 + $0x28] sm:$0xff] }
  0x27   :  { %551 = vmatpush.msra.mxu1 %v164_v22  ;;  %532 = vmatpush.msra.mxu0 %v147_v24  ;;  %v176_v37 = vld [vmem:[#allocation2 + $0x130] sm:$0xff]  ;;  %v175_v41 = vld [vmem:[#allocation2 + $0x128] sm:$0xff]  ;;  %v142_v44 = vld [vmem:[#allocation2 + $0x20] sm:$0xff] }
  0x28   :  { %591 = vmatpush.msra.mxu3 %v196_v23  ;;  %572 = vmatpush.msra.mxu2 %v179_v25  ;;  %v160_v38 = vld [vmem:[#allocation2 + $0xb0] sm:$0xff]  ;;  %v159_v42 = vld [vmem:[#allocation2 + $0xa8] sm:$0xff]  ;;  %v174_v45 = vld [vmem:[#allocation2 + $0x120] sm:$0xff] }
  0x29   :  { %552 = vmatpush.msra.mxu1 %v163_v26  ;;  %533 = vmatpush.msra.mxu0 %v146_v28  ;;  %v192_v39 = vld [vmem:[#allocation2 + $0x1b0] sm:$0xff]  ;;  %v191_v43 = vld [vmem:[#allocation2 + $0x1a8] sm:$0xff]  ;;  %v158_v46 = vld [vmem:[#allocation2 + $0xa0] sm:$0xff] }
  0x2a   :  { %592 = vmatpush.msra.mxu3 %v195_v27  ;;  %573 = vmatpush.msra.mxu2 %v178_v29  ;;  %v190_v47 = vld [vmem:[#allocation2 + $0x1a0] sm:$0xff]  ;;  %v141_v48 = vld [vmem:[#allocation2 + $0x18] sm:$0xff]  ;;  %v140_v52 = vld [vmem:[#allocation2 + $0x10] sm:$0xff] }
  0x2b   :  { %553 = vmatpush.msra.mxu1 %v162_v30  ;;  %534 = vmatpush.msra.mxu0 %v145_v32  ;;  %v173_v49 = vld [vmem:[#allocation2 + $0x118] sm:$0xff]  ;;  %v172_v53 = vld [vmem:[#allocation2 + $0x110] sm:$0xff]  ;;  %v139_v56 = vld [vmem:[#allocation2 + $0x8] sm:$0xff] }
  0x2c   :  { %593 = vmatpush.msra.mxu3 %v194_v31  ;;  %574 = vmatpush.msra.mxu2 %v177_v33  ;;  %v157_v50 = vld [vmem:[#allocation2 + $0x98] sm:$0xff]  ;;  %v156_v54 = vld [vmem:[#allocation2 + $0x90] sm:$0xff]  ;;  %v171_v57 = vld [vmem:[#allocation2 + $0x108] sm:$0xff] }
  0x2d   :  { %554 = vmatpush.msra.mxu1 %v161_v34  ;;  %535 = vmatpush.msra.mxu0 %v144_v36  ;;  %v189_v51 = vld [vmem:[#allocation2 + $0x198] sm:$0xff]  ;;  %v188_v55 = vld [vmem:[#allocation2 + $0x190] sm:$0xff]  ;;  %v155_v58 = vld [vmem:[#allocation2 + $0x88] sm:$0xff] }
  0x2e   :  { %594 = vmatpush.msra.mxu3 %v193_v35  ;;  %575 = vmatpush.msra.mxu2 %v176_v37  ;;  %v187_v59 = vld [vmem:[#allocation2 + $0x188] sm:$0xff]  ;;  %v138_v60 = vld [vmem:[#allocation2] sm:$0xff]  ;;  %v217_v62 = vld [vmem:[#allocation2 + $0x278] sm:$0xff] }
  0x2f   :  { %555 = vmatpush.msra.mxu1 %v160_v38  ;;  %536 = vmatpush.msra.mxu0 %v143_v40  ;;  %v170_v61 = vld [vmem:[#allocation2 + $0x100] sm:$0xff]  ;;  %v249_v63 = vld [vmem:[#allocation2 + $0x378] sm:$0xff]  ;;  %v216_v2 = vld [vmem:[#allocation2 + $0x270] sm:$0xff] }
  0x30   :  { %595 = vmatpush.msra.mxu3 %v192_v39  ;;  %576 = vmatpush.msra.mxu2 %v175_v41  ;;  %v154_v0 = vld [vmem:[#allocation2 + $0x80] sm:$0xff]  ;;  %v233_v3 = vld [vmem:[#allocation2 + $0x2f8] sm:$0xff]  ;;  %v248_v4 = vld [vmem:[#allocation2 + $0x370] sm:$0xff] }
  0x31   :  { %556 = vmatpush.msra.mxu1 %v159_v42  ;;  %537 = vmatpush.msra.mxu0 %v142_v44  ;;  %v186_v1 = vld [vmem:[#allocation2 + $0x180] sm:$0xff]  ;;  %v265_v5 = vld [vmem:[#allocation2 + $0x3f8] sm:$0xff]  ;;  %v215_v6 = vld [vmem:[#allocation2 + $0x268] sm:$0xff] }
  0x32   :  { %596 = vmatpush.msra.mxu3 %v191_v43  ;;  %577 = vmatpush.msra.mxu2 %v174_v45  ;;  %v232_v7 = vld [vmem:[#allocation2 + $0x2f0] sm:$0xff]  ;;  %v247_v8 = vld [vmem:[#allocation2 + $0x368] sm:$0xff]  ;;  %v214_v10 = vld [vmem:[#allocation2 + $0x260] sm:$0xff] }
  0x33   :  { %557 = vmatpush.msra.mxu1 %v158_v46  ;;  %538 = vmatpush.msra.mxu0 %v141_v48  ;;  %v264_v9 = vld [vmem:[#allocation2 + $0x3f0] sm:$0xff]  ;;  %v231_v11 = vld [vmem:[#allocation2 + $0x2e8] sm:$0xff]  ;;  %v246_v12 = vld [vmem:[#allocation2 + $0x360] sm:$0xff] }
  0x34   :  { %597 = vmatpush.msra.mxu3 %v190_v47  ;;  %578 = vmatpush.msra.mxu2 %v173_v49  ;;  %v263_v13 = vld [vmem:[#allocation2 + $0x3e8] sm:$0xff]  ;;  %v213_v14 = vld [vmem:[#allocation2 + $0x258] sm:$0xff]  ;;  %v230_v15 = vld [vmem:[#allocation2 + $0x2e0] sm:$0xff] }
  0x35   :  { %558 = vmatpush.msra.mxu1 %v157_v50  ;;  %539 = vmatpush.msra.mxu0 %v140_v52  ;;  %v245_v16 = vld [vmem:[#allocation2 + $0x358] sm:$0xff]  ;;  %v262_v17 = vld [vmem:[#allocation2 + $0x3e0] sm:$0xff]  ;;  %v212_v18 = vld [vmem:[#allocation2 + $0x250] sm:$0xff] }
  0x36   :  { %598 = vmatpush.msra.mxu3 %v189_v51  ;;  %579 = vmatpush.msra.mxu2 %v172_v53  ;;  %v229_v19 = vld [vmem:[#allocation2 + $0x2d8] sm:$0xff]  ;;  %v244_v20 = vld [vmem:[#allocation2 + $0x350] sm:$0xff]  ;;  %v211_v22 = vld [vmem:[#allocation2 + $0x248] sm:$0xff] }
  0x37   :  { %559 = vmatpush.msra.mxu1 %v156_v54  ;;  %540 = vmatpush.msra.mxu0 %v139_v56  ;;  %v261_v21 = vld [vmem:[#allocation2 + $0x3d8] sm:$0xff]  ;;  %v228_v23 = vld [vmem:[#allocation2 + $0x2d0] sm:$0xff]  ;;  %v243_v24 = vld [vmem:[#allocation2 + $0x348] sm:$0xff] }
  0x38   :  { %599 = vmatpush.msra.mxu3 %v188_v55  ;;  %580 = vmatpush.msra.mxu2 %v171_v57  ;;  %v260_v25 = vld [vmem:[#allocation2 + $0x3d0] sm:$0xff]  ;;  %v210_v26 = vld [vmem:[#allocation2 + $0x240] sm:$0xff]  ;;  %v227_v27 = vld [vmem:[#allocation2 + $0x2c8] sm:$0xff] }
  0x39   :  { %560 = vmatpush.msra.mxu1 %v155_v58  ;;  %541 = vmatpush.msra.mxu0 %v138_v60  ;;  %v242_v28 = vld [vmem:[#allocation2 + $0x340] sm:$0xff]  ;;  %v259_v29 = vld [vmem:[#allocation2 + $0x3c8] sm:$0xff]  ;;  %v209_v30 = vld [vmem:[#allocation2 + $0x238] sm:$0xff] }
  0x3a   :  { %600 = vmatpush.msra.mxu3 %v187_v59  ;;  %581 = vmatpush.msra.mxu2 %v170_v61  ;;  %v226_v31 = vld [vmem:[#allocation2 + $0x2c0] sm:$0xff]  ;;  %v241_v32 = vld [vmem:[#allocation2 + $0x338] sm:$0xff]  ;;  %v208_v34 = vld [vmem:[#allocation2 + $0x230] sm:$0xff] }
  0x3b   :  { %606 = vmatpush.msrb.mxu0 %v217_v62  ;;  %561 = vmatpush.msra.mxu1 %v154_v0  ;;  %v258_v33 = vld [vmem:[#allocation2 + $0x3c0] sm:$0xff]  ;;  %v225_v35 = vld [vmem:[#allocation2 + $0x2b8] sm:$0xff]  ;;  %v240_v36 = vld [vmem:[#allocation2 + $0x330] sm:$0xff] }
  0x3c   :  { %646 = vmatpush.msrb.mxu2 %v249_v63  ;;  %601 = vmatpush.msra.mxu3 %v186_v1  ;;  %v257_v37 = vld [vmem:[#allocation2 + $0x3b8] sm:$0xff]  ;;  %v207_v38 = vld [vmem:[#allocation2 + $0x228] sm:$0xff]  ;;  %v224_v39 = vld [vmem:[#allocation2 + $0x2b0] sm:$0xff] }
  0x3d   :  { %607 = vmatpush.msrb.mxu0 %v216_v2  ;;  %626 = vmatpush.msrb.mxu1 %v233_v3  ;;  %v239_v40 = vld [vmem:[#allocation2 + $0x328] sm:$0xff]  ;;  %v256_v41 = vld [vmem:[#allocation2 + $0x3b0] sm:$0xff]  ;;  %v206_v42 = vld [vmem:[#allocation2 + $0x220] sm:$0xff] }
  0x3e   :  { %647 = vmatpush.msrb.mxu2 %v248_v4  ;;  %666 = vmatpush.msrb.mxu3 %v265_v5  ;;  %v223_v43 = vld [vmem:[#allocation2 + $0x2a8] sm:$0xff]  ;;  %v238_v44 = vld [vmem:[#allocation2 + $0x320] sm:$0xff]  ;;  %v205_v46 = vld [vmem:[#allocation2 + $0x218] sm:$0xff] }
  0x3f   :  { %608 = vmatpush.msrb.mxu0 %v215_v6  ;;  %627 = vmatpush.msrb.mxu1 %v232_v7  ;;  %v255_v45 = vld [vmem:[#allocation2 + $0x3a8] sm:$0xff]  ;;  %v222_v47 = vld [vmem:[#allocation2 + $0x2a0] sm:$0xff]  ;;  %v237_v48 = vld [vmem:[#allocation2 + $0x318] sm:$0xff] }
  0x40   :  { %648 = vmatpush.msrb.mxu2 %v247_v8  ;;  %667 = vmatpush.msrb.mxu3 %v264_v9  ;;  %v254_v49 = vld [vmem:[#allocation2 + $0x3a0] sm:$0xff]  ;;  %v204_v50 = vld [vmem:[#allocation2 + $0x210] sm:$0xff]  ;;  %v221_v51 = vld [vmem:[#allocation2 + $0x298] sm:$0xff] }
  0x41   :  { %609 = vmatpush.msrb.mxu0 %v214_v10  ;;  %628 = vmatpush.msrb.mxu1 %v231_v11  ;;  %v236_v52 = vld [vmem:[#allocation2 + $0x310] sm:$0xff]  ;;  %v253_v53 = vld [vmem:[#allocation2 + $0x398] sm:$0xff]  ;;  %v203_v54 = vld [vmem:[#allocation2 + $0x208] sm:$0xff] }
  0x42   :  { %649 = vmatpush.msrb.mxu2 %v246_v12  ;;  %668 = vmatpush.msrb.mxu3 %v263_v13  ;;  %v220_v55 = vld [vmem:[#allocation2 + $0x290] sm:$0xff]  ;;  %v235_v56 = vld [vmem:[#allocation2 + $0x308] sm:$0xff]  ;;  %v202_v58 = vld [vmem:[#allocation2 + $0x200] sm:$0xff] }
  0x43   :  { %610 = vmatpush.msrb.mxu0 %v213_v14  ;;  %629 = vmatpush.msrb.mxu1 %v230_v15  ;;  %v252_v57 = vld [vmem:[#allocation2 + $0x390] sm:$0xff]  ;;  %v219_v59 = vld [vmem:[#allocation2 + $0x288] sm:$0xff]  ;;  %v234_v60 = vld [vmem:[#allocation2 + $0x300] sm:$0xff] }
  0x44   :  { %650 = vmatpush.msrb.mxu2 %v245_v16  ;;  %669 = vmatpush.msrb.mxu3 %v262_v17  ;;  %v251_v61 = vld [vmem:[#allocation2 + $0x388] sm:$0xff]  ;;  %v114_v62 = vld [vmem:[%s1405_s0] sm:$0xff]  ;;  %v116_v63 = vld [vmem:[%s1405_s0 + $0x10] sm:$0xff] }
  0x45   :  { %611 = vmatpush.msrb.mxu0 %v212_v18  ;;  %630 = vmatpush.msrb.mxu1 %v229_v19  ;;  %v281_v0 = vld [vmem:[#allocation2 + $0x478] sm:$0xff]  ;;  %v218_v2 = vld [vmem:[#allocation2 + $0x280] sm:$0xff]  ;;  %v115_v4 = vld [vmem:[%s1405_s0 + $0x8] sm:$0xff] }
  0x46   :  { %651 = vmatpush.msrb.mxu2 %v244_v20  ;;  %670 = vmatpush.msrb.mxu3 %v261_v21  ;;  %v313_v1 = vld [vmem:[#allocation2 + $0x578] sm:$0xff]  ;;  %v250_v3 = vld [vmem:[#allocation2 + $0x380] sm:$0xff]  ;;  %v280_v6 = vld [vmem:[#allocation2 + $0x470] sm:$0xff] }
  0x47   :  { %612 = vmatpush.msrb.mxu0 %v211_v22  ;;  %631 = vmatpush.msrb.mxu1 %v228_v23  ;;  %v117_v5 = vld [vmem:[%s1405_s0 + $0x18] sm:$0xff]  ;;  %v312_v8 = vld [vmem:[#allocation2 + $0x570] sm:$0xff]  ;;  %v279_v10 = vld [vmem:[#allocation2 + $0x468] sm:$0xff] }
  0x48   :  { %652 = vmatpush.msrb.mxu2 %v243_v24  ;;  %671 = vmatpush.msrb.mxu3 %v260_v25  ;;  %v297_v7 = vld [vmem:[#allocation2 + $0x4f8] sm:$0xff]  ;;  %v296_v11 = vld [vmem:[#allocation2 + $0x4f0] sm:$0xff]  ;;  %v311_v12 = vld [vmem:[#allocation2 + $0x568] sm:$0xff] }
  0x49   :  { %613 = vmatpush.msrb.mxu0 %v210_v26  ;;  %632 = vmatpush.msrb.mxu1 %v227_v27  ;;  %v329_v9 = vld [vmem:[#allocation2 + $0x5f8] sm:$0xff]  ;;  %v328_v13 = vld [vmem:[#allocation2 + $0x5f0] sm:$0xff]  ;;  %v278_v14 = vld [vmem:[#allocation2 + $0x460] sm:$0xff] }
  0x4a   :  { %653 = vmatpush.msrb.mxu2 %v242_v28  ;;  %672 = vmatpush.msrb.mxu3 %v259_v29  ;;  %v295_v15 = vld [vmem:[#allocation2 + $0x4e8] sm:$0xff]  ;;  %v310_v16 = vld [vmem:[#allocation2 + $0x560] sm:$0xff]  ;;  %v120_v18 = vld [vmem:[%s1405_s0 + $0x30] sm:$0xff] }
  0x4b   :  { %614 = vmatpush.msrb.mxu0 %v209_v30  ;;  %633 = vmatpush.msrb.mxu1 %v226_v31  ;;  %v327_v17 = vld [vmem:[#allocation2 + $0x5e8] sm:$0xff]  ;;  %v277_v19 = vld [vmem:[#allocation2 + $0x458] sm:$0xff]  ;;  %v294_v20 = vld [vmem:[#allocation2 + $0x4e0] sm:$0xff] }
  0x4c   :  { %654 = vmatpush.msrb.mxu2 %v241_v32  ;;  %673 = vmatpush.msrb.mxu3 %v258_v33  ;;  %v309_v21 = vld [vmem:[#allocation2 + $0x558] sm:$0xff]  ;;  %v326_v22 = vld [vmem:[#allocation2 + $0x5e0] sm:$0xff]  ;;  %v276_v25 = vld [vmem:[#allocation2 + $0x450] sm:$0xff] }
  0x4d   :  { %615 = vmatpush.msrb.mxu0 %v208_v34  ;;  %634 = vmatpush.msrb.mxu1 %v225_v35  ;;  %v118_v23 = vld [vmem:[%s1405_s0 + $0x20] sm:$0xff]  ;;  %v121_v24 = vld [vmem:[%s1405_s0 + $0x38] sm:$0xff]  ;;  %v308_v27 = vld [vmem:[#allocation2 + $0x550] sm:$0xff] }
  0x4e   :  { %655 = vmatpush.msrb.mxu2 %v240_v36  ;;  %674 = vmatpush.msrb.mxu3 %v257_v37  ;;  %v293_v26 = vld [vmem:[#allocation2 + $0x4d8] sm:$0xff]  ;;  %v119_v29 = vld [vmem:[%s1405_s0 + $0x28] sm:$0xff]  ;;  %v292_v31 = vld [vmem:[#allocation2 + $0x4d0] sm:$0xff] }
  0x4f   :  { %616 = vmatpush.msrb.mxu0 %v207_v38  ;;  %635 = vmatpush.msrb.mxu1 %v224_v39  ;;  %v325_v28 = vld [vmem:[#allocation2 + $0x5d8] sm:$0xff]  ;;  %v275_v30 = vld [vmem:[#allocation2 + $0x448] sm:$0xff]  ;;  %v324_v33 = vld [vmem:[#allocation2 + $0x5d0] sm:$0xff] }
  0x50   :  { %656 = vmatpush.msrb.mxu2 %v239_v40  ;;  %675 = vmatpush.msrb.mxu3 %v256_v41  ;;  %v307_v32 = vld [vmem:[#allocation2 + $0x548] sm:$0xff]  ;;  %v274_v34 = vld [vmem:[#allocation2 + $0x440] sm:$0xff]  ;;  %v273_v38 = vld [vmem:[#allocation2 + $0x438] sm:$0xff] }
  0x51   :  { %617 = vmatpush.msrb.mxu0 %v206_v42  ;;  %636 = vmatpush.msrb.mxu1 %v223_v43  ;;  %v291_v35 = vld [vmem:[#allocation2 + $0x4c8] sm:$0xff]  ;;  %v306_v36 = vld [vmem:[#allocation2 + $0x540] sm:$0xff]  ;;  %v305_v40 = vld [vmem:[#allocation2 + $0x538] sm:$0xff] }
  0x52   :  { %657 = vmatpush.msrb.mxu2 %v238_v44  ;;  %676 = vmatpush.msrb.mxu3 %v255_v45  ;;  %v323_v37 = vld [vmem:[#allocation2 + $0x5c8] sm:$0xff]  ;;  %v290_v39 = vld [vmem:[#allocation2 + $0x4c0] sm:$0xff]  ;;  %v272_v42 = vld [vmem:[#allocation2 + $0x430] sm:$0xff] }
  0x53   :  { %618 = vmatpush.msrb.mxu0 %v205_v46  ;;  %637 = vmatpush.msrb.mxu1 %v222_v47  ;;  %v322_v41 = vld [vmem:[#allocation2 + $0x5c0] sm:$0xff]  ;;  %v289_v43 = vld [vmem:[#allocation2 + $0x4b8] sm:$0xff]  ;;  %v304_v44 = vld [vmem:[#allocation2 + $0x530] sm:$0xff] }
  0x54   :  { %658 = vmatpush.msrb.mxu2 %v237_v48  ;;  %677 = vmatpush.msrb.mxu3 %v254_v49  ;;  %v321_v45 = vld [vmem:[#allocation2 + $0x5b8] sm:$0xff]  ;;  %v271_v46 = vld [vmem:[#allocation2 + $0x428] sm:$0xff]  ;;  %v288_v47 = vld [vmem:[#allocation2 + $0x4b0] sm:$0xff] }
  0x55   :  { %619 = vmatpush.msrb.mxu0 %v204_v50  ;;  %638 = vmatpush.msrb.mxu1 %v221_v51  ;;  %v303_v48 = vld [vmem:[#allocation2 + $0x528] sm:$0xff]  ;;  %v320_v49 = vld [vmem:[#allocation2 + $0x5b0] sm:$0xff]  ;;  %v270_v50 = vld [vmem:[#allocation2 + $0x420] sm:$0xff] }
  0x56   :  { %659 = vmatpush.msrb.mxu2 %v236_v52  ;;  %678 = vmatpush.msrb.mxu3 %v253_v53  ;;  %v287_v51 = vld [vmem:[#allocation2 + $0x4a8] sm:$0xff]  ;;  %v302_v52 = vld [vmem:[#allocation2 + $0x520] sm:$0xff] }
  0x57   :  { %620 = vmatpush.msrb.mxu0 %v203_v54  ;;  %639 = vmatpush.msrb.mxu1 %v220_v55  ;;  %v319_v53 = vld [vmem:[#allocation2 + $0x5a8] sm:$0xff]  ;;  %v269_v54 = vld [vmem:[#allocation2 + $0x418] sm:$0xff]  ;;  %v286_v55 = vld [vmem:[#allocation2 + $0x4a0] sm:$0xff] }
  0x58   :  { %660 = vmatpush.msrb.mxu2 %v235_v56  ;;  %679 = vmatpush.msrb.mxu3 %v252_v57  ;;  %v301_v56 = vld [vmem:[#allocation2 + $0x518] sm:$0xff]  ;;  %v318_v57 = vld [vmem:[#allocation2 + $0x5a0] sm:$0xff] }
  0x59   :  { %621 = vmatpush.msrb.mxu0 %v202_v58  ;;  %640 = vmatpush.msrb.mxu1 %v219_v59  ;;  %v268_v58 = vld [vmem:[#allocation2 + $0x410] sm:$0xff]  ;;  %v285_v59 = vld [vmem:[#allocation2 + $0x498] sm:$0xff] }
  0x5a   :  { %661 = vmatpush.msrb.mxu2 %v234_v60  ;;  %680 = vmatpush.msrb.mxu3 %v251_v61  ;;  %v300_v60 = vld [vmem:[#allocation2 + $0x510] sm:$0xff]  ;;  %v317_v61 = vld [vmem:[#allocation2 + $0x598] sm:$0xff] }
  0x5b   :  { %542 = vmatmul.f32.vlgmr.msra.gmra.mxu0 %v114_v62  ;;  %582 = vmatmul.f32.vlgmr.msra.gmra.mxu2 %v116_v63  ;;  %v267_v62 = vld [vmem:[#allocation2 + $0x408] sm:$0xff]  ;;  %v284_v63 = vld [vmem:[#allocation2 + $0x490] sm:$0xff] }
  0x5c   :  { %686 = vmatpush.msra.mxu0 %v281_v0  ;;  %726 = vmatpush.msra.mxu2 %v313_v1  ;;  %v299_v0 = vld [vmem:[#allocation2 + $0x508] sm:$0xff]  ;;  %v316_v1 = vld [vmem:[#allocation2 + $0x590] sm:$0xff] }
  0x5d   :  { %641 = vmatpush.msrb.mxu1 %v218_v2  ;;  %681 = vmatpush.msrb.mxu3 %v250_v3  ;;  %v266_v2 = vld [vmem:[#allocation2 + $0x400] sm:$0xff]  ;;  %v283_v3 = vld [vmem:[#allocation2 + $0x488] sm:$0xff] }
  0x5e   :  { %562 = vmatmul.f32.vlgmr.msra.gmra.mxu1 %v115_v4  ;;  %602 = vmatmul.f32.vlgmr.msra.gmra.mxu3 %v117_v5  ;;  %v298_v4 = vld [vmem:[#allocation2 + $0x500] sm:$0xff]  ;;  %v315_v5 = vld [vmem:[#allocation2 + $0x588] sm:$0xff] }
  0x5f   :  { %687 = vmatpush.msra.mxu0 %v280_v6  ;;  %706 = vmatpush.msra.mxu1 %v297_v7  ;;  %v122_v6 = vld [vmem:[%s1405_s0 + $0x40] sm:$0xff]  ;;  %v124_v7 = vld [vmem:[%s1405_s0 + $0x50] sm:$0xff] }
  0x60   :  { %727 = vmatpush.msra.mxu2 %v312_v8  ;;  %746 = vmatpush.msra.mxu3 %v329_v9  ;;  %v345_v8 = vld [vmem:[#allocation2 + $0x678] sm:$0xff] }
  0x61   :  { %688 = vmatpush.msra.mxu0 %v279_v10  ;;  %707 = vmatpush.msra.mxu1 %v296_v11  ;;  %v377_v9 = vld [vmem:[#allocation2 + $0x778] sm:$0xff]  ;;  %v282_v10 = vld [vmem:[#allocation2 + $0x480] sm:$0xff] }
  0x62   :  { %728 = vmatpush.msra.mxu2 %v311_v12  ;;  %747 = vmatpush.msra.mxu3 %v328_v13  ;;  %v314_v11 = vld [vmem:[#allocation2 + $0x580] sm:$0xff]  ;;  %v123_v12 = vld [vmem:[%s1405_s0 + $0x48] sm:$0xff]  ;;  %v125_v13 = vld [vmem:[%s1405_s0 + $0x58] sm:$0xff] }
  0x63   :  { %689 = vmatpush.msra.mxu0 %v278_v14  ;;  %708 = vmatpush.msra.mxu1 %v295_v15  ;;  %v344_v14 = vld [vmem:[#allocation2 + $0x670] sm:$0xff]  ;;  %v361_v15 = vld [vmem:[#allocation2 + $0x6f8] sm:$0xff] }
  0x64   :  { %729 = vmatpush.msra.mxu2 %v310_v16  ;;  %748 = vmatpush.msra.mxu3 %v327_v17  ;;  %v376_v16 = vld [vmem:[#allocation2 + $0x770] sm:$0xff]  ;;  %v393_v17 = vld [vmem:[#allocation2 + $0x7f8] sm:$0xff] }
  0x65   :  { %662 = vmatmul.f32.vlgmr.msrb.gmra.mxu2 %v120_v18  ;;  %690 = vmatpush.msra.mxu0 %v277_v19  ;;  %v343_v18 = vld [vmem:[#allocation2 + $0x668] sm:$0xff]  ;;  %v360_v19 = vld [vmem:[#allocation2 + $0x6f0] sm:$0xff] }
  0x66   :  { %709 = vmatpush.msra.mxu1 %v294_v20  ;;  %730 = vmatpush.msra.mxu2 %v309_v21  ;;  %v375_v20 = vld [vmem:[#allocation2 + $0x768] sm:$0xff]  ;;  %v392_v21 = vld [vmem:[#allocation2 + $0x7f0] sm:$0xff] }
  0x67   :  { %749 = vmatpush.msra.mxu3 %v326_v22  ;;  %622 = vmatmul.f32.vlgmr.msrb.gmra.mxu0 %v118_v23  ;;  %v342_v22 = vld [vmem:[#allocation2 + $0x660] sm:$0xff]  ;;  %v359_v23 = vld [vmem:[#allocation2 + $0x6e8] sm:$0xff] }
  0x68   :  { %682 = vmatmul.f32.vlgmr.msrb.gmra.mxu3 %v121_v24  ;;  %691 = vmatpush.msra.mxu0 %v276_v25  ;;  %v374_v24 = vld [vmem:[#allocation2 + $0x760] sm:$0xff]  ;;  %v391_v25 = vld [vmem:[#allocation2 + $0x7e8] sm:$0xff] }
  0x69   :  { %710 = vmatpush.msra.mxu1 %v293_v26  ;;  %731 = vmatpush.msra.mxu2 %v308_v27  ;;  %v341_v26 = vld [vmem:[#allocation2 + $0x658] sm:$0xff]  ;;  %v358_v27 = vld [vmem:[#allocation2 + $0x6e0] sm:$0xff] }
  0x6a   :  { %750 = vmatpush.msra.mxu3 %v325_v28  ;;  %642 = vmatmul.f32.vlgmr.msrb.gmra.mxu1 %v119_v29  ;;  %v373_v28 = vld [vmem:[#allocation2 + $0x758] sm:$0xff]  ;;  %v390_v29 = vld [vmem:[#allocation2 + $0x7e0] sm:$0xff] }
  0x6b   :  { %692 = vmatpush.msra.mxu0 %v275_v30  ;;  %711 = vmatpush.msra.mxu1 %v292_v31  ;;  %v340_v30 = vld [vmem:[#allocation2 + $0x650] sm:$0xff]  ;;  %v357_v31 = vld [vmem:[#allocation2 + $0x6d8] sm:$0xff] }
  0x6c   :  { %732 = vmatpush.msra.mxu2 %v307_v32  ;;  %751 = vmatpush.msra.mxu3 %v324_v33  ;;  %v372_v32 = vld [vmem:[#allocation2 + $0x750] sm:$0xff]  ;;  %v389_v33 = vld [vmem:[#allocation2 + $0x7d8] sm:$0xff] }
  0x6d   :  { %693 = vmatpush.msra.mxu0 %v274_v34  ;;  %712 = vmatpush.msra.mxu1 %v291_v35  ;;  %v339_v34 = vld [vmem:[#allocation2 + $0x648] sm:$0xff]  ;;  %v356_v35 = vld [vmem:[#allocation2 + $0x6d0] sm:$0xff] }
  0x6e   :  { %733 = vmatpush.msra.mxu2 %v306_v36  ;;  %752 = vmatpush.msra.mxu3 %v323_v37  ;;  %v371_v36 = vld [vmem:[#allocation2 + $0x748] sm:$0xff]  ;;  %v388_v37 = vld [vmem:[#allocation2 + $0x7d0] sm:$0xff] }
  0x6f   :  { %694 = vmatpush.msra.mxu0 %v273_v38  ;;  %713 = vmatpush.msra.mxu1 %v290_v39  ;;  %v338_v38 = vld [vmem:[#allocation2 + $0x640] sm:$0xff]  ;;  %v355_v39 = vld [vmem:[#allocation2 + $0x6c8] sm:$0xff] }
  0x70   :  { %734 = vmatpush.msra.mxu2 %v305_v40  ;;  %753 = vmatpush.msra.mxu3 %v322_v41  ;;  %v370_v40 = vld [vmem:[#allocation2 + $0x740] sm:$0xff]  ;;  %v387_v41 = vld [vmem:[#allocation2 + $0x7c8] sm:$0xff] }
  0x71   :  { %695 = vmatpush.msra.mxu0 %v272_v42  ;;  %714 = vmatpush.msra.mxu1 %v289_v43  ;;  %v337_v42 = vld [vmem:[#allocation2 + $0x638] sm:$0xff]  ;;  %v354_v43 = vld [vmem:[#allocation2 + $0x6c0] sm:$0xff] }
  0x72   :  { %735 = vmatpush.msra.mxu2 %v304_v44  ;;  %754 = vmatpush.msra.mxu3 %v321_v45  ;;  %v369_v44 = vld [vmem:[#allocation2 + $0x738] sm:$0xff]  ;;  %v386_v45 = vld [vmem:[#allocation2 + $0x7c0] sm:$0xff] }
  0x73   :  { %696 = vmatpush.msra.mxu0 %v271_v46  ;;  %715 = vmatpush.msra.mxu1 %v288_v47  ;;  %v336_v46 = vld [vmem:[#allocation2 + $0x630] sm:$0xff]  ;;  %v353_v47 = vld [vmem:[#allocation2 + $0x6b8] sm:$0xff] }
  0x74   :  { %736 = vmatpush.msra.mxu2 %v303_v48  ;;  %755 = vmatpush.msra.mxu3 %v320_v49  ;;  %v368_v48 = vld [vmem:[#allocation2 + $0x730] sm:$0xff]  ;;  %v385_v49 = vld [vmem:[#allocation2 + $0x7b8] sm:$0xff] }
  0x75   :  { %697 = vmatpush.msra.mxu0 %v270_v50  ;;  %716 = vmatpush.msra.mxu1 %v287_v51  ;;  %v335_v50 = vld [vmem:[#allocation2 + $0x628] sm:$0xff]  ;;  %v352_v51 = vld [vmem:[#allocation2 + $0x6b0] sm:$0xff] }
  0x76   :  { %737 = vmatpush.msra.mxu2 %v302_v52  ;;  %756 = vmatpush.msra.mxu3 %v319_v53  ;;  %v367_v52 = vld [vmem:[#allocation2 + $0x728] sm:$0xff]  ;;  %v384_v53 = vld [vmem:[#allocation2 + $0x7b0] sm:$0xff] }
  0x77   :  { %698 = vmatpush.msra.mxu0 %v269_v54  ;;  %717 = vmatpush.msra.mxu1 %v286_v55  ;;  %v334_v54 = vld [vmem:[#allocation2 + $0x620] sm:$0xff]  ;;  %v351_v55 = vld [vmem:[#allocation2 + $0x6a8] sm:$0xff] }
  0x78   :  { %738 = vmatpush.msra.mxu2 %v301_v56  ;;  %757 = vmatpush.msra.mxu3 %v318_v57  ;;  %v366_v56 = vld [vmem:[#allocation2 + $0x720] sm:$0xff]  ;;  %v383_v57 = vld [vmem:[#allocation2 + $0x7a8] sm:$0xff] }
  0x79   :  { %699 = vmatpush.msra.mxu0 %v268_v58  ;;  %718 = vmatpush.msra.mxu1 %v285_v59  ;;  %v333_v58 = vld [vmem:[#allocation2 + $0x618] sm:$0xff]  ;;  %v350_v59 = vld [vmem:[#allocation2 + $0x6a0] sm:$0xff] }
  0x7a   :  { %739 = vmatpush.msra.mxu2 %v300_v60  ;;  %758 = vmatpush.msra.mxu3 %v317_v61  ;;  %v365_v60 = vld [vmem:[#allocation2 + $0x718] sm:$0xff]  ;;  %v382_v61 = vld [vmem:[#allocation2 + $0x7a0] sm:$0xff] }
  0x7b   :  { %700 = vmatpush.msra.mxu0 %v267_v62  ;;  %719 = vmatpush.msra.mxu1 %v284_v63  ;;  %v332_v62 = vld [vmem:[#allocation2 + $0x610] sm:$0xff]  ;;  %v349_v63 = vld [vmem:[#allocation2 + $0x698] sm:$0xff] }
  0x7c   :  { %740 = vmatpush.msra.mxu2 %v299_v0  ;;  %759 = vmatpush.msra.mxu3 %v316_v1  ;;  %v364_v0 = vld [vmem:[#allocation2 + $0x710] sm:$0xff]  ;;  %v381_v1 = vld [vmem:[#allocation2 + $0x798] sm:$0xff] }
  0x7d   :  { %701 = vmatpush.msra.mxu0 %v266_v2  ;;  %720 = vmatpush.msra.mxu1 %v283_v3  ;;  %v331_v2 = vld [vmem:[#allocation2 + $0x608] sm:$0xff]  ;;  %v348_v3 = vld [vmem:[#allocation2 + $0x690] sm:$0xff] }
  0x7e   :  { %741 = vmatpush.msra.mxu2 %v298_v4  ;;  %760 = vmatpush.msra.mxu3 %v315_v5  ;;  %v363_v4 = vld [vmem:[#allocation2 + $0x708] sm:$0xff]  ;;  %v380_v5 = vld [vmem:[#allocation2 + $0x790] sm:$0xff] }
  0x7f   :  { %702 = vmatmul.f32.vlgmr.msra.gmra.mxu0 %v122_v6  ;;  %742 = vmatmul.f32.vlgmr.msra.gmra.mxu2 %v124_v7  ;;  %v330_v6 = vld [vmem:[#allocation2 + $0x600] sm:$0xff]  ;;  %v347_v7 = vld [vmem:[#allocation2 + $0x688] sm:$0xff] }
  0x80   :  { %766 = vmatpush.msrb.mxu0 %v345_v8  ;;  %806 = vmatpush.msrb.mxu2 %v377_v9  ;;  %v362_v8 = vld [vmem:[#allocation2 + $0x700] sm:$0xff]  ;;  %v379_v9 = vld [vmem:[#allocation2 + $0x788] sm:$0xff] }
  0x81   :  { %721 = vmatpush.msra.mxu1 %v282_v10  ;;  %761 = vmatpush.msra.mxu3 %v314_v11  ;;  %v126_v10 = vld [vmem:[%s1405_s0 + $0x60] sm:$0xff]  ;;  %v128_v11 = vld [vmem:[%s1405_s0 + $0x70] sm:$0xff] }
  0x82   :  { %722 = vmatmul.f32.vlgmr.msra.gmra.mxu1 %v123_v12  ;;  %762 = vmatmul.f32.vlgmr.msra.gmra.mxu3 %v125_v13  ;;  %v409_v12 = vld [vmem:[#allocation2 + $0x878] sm:$0xff] }
  0x83   :  { %767 = vmatpush.msrb.mxu0 %v344_v14  ;;  %786 = vmatpush.msrb.mxu1 %v361_v15  ;;  %v441_v13 = vld [vmem:[#allocation2 + $0x978] sm:$0xff]  ;;  %v346_v14 = vld [vmem:[#allocation2 + $0x680] sm:$0xff] }
  0x84   :  { %807 = vmatpush.msrb.mxu2 %v376_v16  ;;  %826 = vmatpush.msrb.mxu3 %v393_v17  ;;  %v378_v15 = vld [vmem:[#allocation2 + $0x780] sm:$0xff]  ;;  %v127_v16 = vld [vmem:[%s1405_s0 + $0x68] sm:$0xff]  ;;  %v129_v17 = vld [vmem:[%s1405_s0 + $0x78] sm:$0xff] }
  0x85   :  { %768 = vmatpush.msrb.mxu0 %v343_v18  ;;  %787 = vmatpush.msrb.mxu1 %v360_v19  ;;  %v408_v18 = vld [vmem:[#allocation2 + $0x870] sm:$0xff]  ;;  %v425_v19 = vld [vmem:[#allocation2 + $0x8f8] sm:$0xff] }
  0x86   :  { %808 = vmatpush.msrb.mxu2 %v375_v20  ;;  %827 = vmatpush.msrb.mxu3 %v392_v21  ;;  %v440_v20 = vld [vmem:[#allocation2 + $0x970] sm:$0xff]  ;;  %v457_v21 = vld [vmem:[#allocation2 + $0x9f8] sm:$0xff] }
  0x87   :  { %769 = vmatpush.msrb.mxu0 %v342_v22  ;;  %788 = vmatpush.msrb.mxu1 %v359_v23  ;;  %v407_v22 = vld [vmem:[#allocation2 + $0x868] sm:$0xff]  ;;  %v424_v23 = vld [vmem:[#allocation2 + $0x8f0] sm:$0xff] }
  0x88   :  { %809 = vmatpush.msrb.mxu2 %v374_v24  ;;  %828 = vmatpush.msrb.mxu3 %v391_v25  ;;  %v439_v24 = vld [vmem:[#allocation2 + $0x968] sm:$0xff]  ;;  %v456_v25 = vld [vmem:[#allocation2 + $0x9f0] sm:$0xff] }
  0x89   :  { %770 = vmatpush.msrb.mxu0 %v341_v26  ;;  %789 = vmatpush.msrb.mxu1 %v358_v27  ;;  %v406_v26 = vld [vmem:[#allocation2 + $0x860] sm:$0xff]  ;;  %v423_v27 = vld [vmem:[#allocation2 + $0x8e8] sm:$0xff] }
  0x8a   :  { %810 = vmatpush.msrb.mxu2 %v373_v28  ;;  %829 = vmatpush.msrb.mxu3 %v390_v29  ;;  %v438_v28 = vld [vmem:[#allocation2 + $0x960] sm:$0xff]  ;;  %v455_v29 = vld [vmem:[#allocation2 + $0x9e8] sm:$0xff] }
  0x8b   :  { %771 = vmatpush.msrb.mxu0 %v340_v30  ;;  %790 = vmatpush.msrb.mxu1 %v357_v31  ;;  %v405_v30 = vld [vmem:[#allocation2 + $0x858] sm:$0xff]  ;;  %v422_v31 = vld [vmem:[#allocation2 + $0x8e0] sm:$0xff] }
  0x8c   :  { %811 = vmatpush.msrb.mxu2 %v372_v32  ;;  %830 = vmatpush.msrb.mxu3 %v389_v33  ;;  %v437_v32 = vld [vmem:[#allocation2 + $0x958] sm:$0xff]  ;;  %v454_v33 = vld [vmem:[#allocation2 + $0x9e0] sm:$0xff] }
  0x8d   :  { %772 = vmatpush.msrb.mxu0 %v339_v34  ;;  %791 = vmatpush.msrb.mxu1 %v356_v35  ;;  %v404_v34 = vld [vmem:[#allocation2 + $0x850] sm:$0xff]  ;;  %v421_v35 = vld [vmem:[#allocation2 + $0x8d8] sm:$0xff] }
  0x8e   :  { %812 = vmatpush.msrb.mxu2 %v371_v36  ;;  %831 = vmatpush.msrb.mxu3 %v388_v37  ;;  %v436_v36 = vld [vmem:[#allocation2 + $0x950] sm:$0xff]  ;;  %v453_v37 = vld [vmem:[#allocation2 + $0x9d8] sm:$0xff] }
  0x8f   :  { %773 = vmatpush.msrb.mxu0 %v338_v38  ;;  %792 = vmatpush.msrb.mxu1 %v355_v39  ;;  %v403_v38 = vld [vmem:[#allocation2 + $0x848] sm:$0xff]  ;;  %v420_v39 = vld [vmem:[#allocation2 + $0x8d0] sm:$0xff] }
  0x90   :  { %813 = vmatpush.msrb.mxu2 %v370_v40  ;;  %832 = vmatpush.msrb.mxu3 %v387_v41  ;;  %v435_v40 = vld [vmem:[#allocation2 + $0x948] sm:$0xff]  ;;  %v452_v41 = vld [vmem:[#allocation2 + $0x9d0] sm:$0xff] }
  0x91   :  { %774 = vmatpush.msrb.mxu0 %v337_v42  ;;  %793 = vmatpush.msrb.mxu1 %v354_v43  ;;  %v402_v42 = vld [vmem:[#allocation2 + $0x840] sm:$0xff]  ;;  %v419_v43 = vld [vmem:[#allocation2 + $0x8c8] sm:$0xff] }
  0x92   :  { %814 = vmatpush.msrb.mxu2 %v369_v44  ;;  %833 = vmatpush.msrb.mxu3 %v386_v45  ;;  %v434_v44 = vld [vmem:[#allocation2 + $0x940] sm:$0xff]  ;;  %v451_v45 = vld [vmem:[#allocation2 + $0x9c8] sm:$0xff] }
  0x93   :  { %775 = vmatpush.msrb.mxu0 %v336_v46  ;;  %794 = vmatpush.msrb.mxu1 %v353_v47  ;;  %v401_v46 = vld [vmem:[#allocation2 + $0x838] sm:$0xff]  ;;  %v418_v47 = vld [vmem:[#allocation2 + $0x8c0] sm:$0xff] }
  0x94   :  { %815 = vmatpush.msrb.mxu2 %v368_v48  ;;  %834 = vmatpush.msrb.mxu3 %v385_v49  ;;  %v433_v48 = vld [vmem:[#allocation2 + $0x938] sm:$0xff]  ;;  %v450_v49 = vld [vmem:[#allocation2 + $0x9c0] sm:$0xff] }
  0x95   :  { %776 = vmatpush.msrb.mxu0 %v335_v50  ;;  %795 = vmatpush.msrb.mxu1 %v352_v51  ;;  %v400_v50 = vld [vmem:[#allocation2 + $0x830] sm:$0xff]  ;;  %v417_v51 = vld [vmem:[#allocation2 + $0x8b8] sm:$0xff] }
  0x96   :  { %816 = vmatpush.msrb.mxu2 %v367_v52  ;;  %835 = vmatpush.msrb.mxu3 %v384_v53  ;;  %v432_v52 = vld [vmem:[#allocation2 + $0x930] sm:$0xff]  ;;  %v449_v53 = vld [vmem:[#allocation2 + $0x9b8] sm:$0xff] }
  0x97   :  { %777 = vmatpush.msrb.mxu0 %v334_v54  ;;  %796 = vmatpush.msrb.mxu1 %v351_v55  ;;  %v399_v54 = vld [vmem:[#allocation2 + $0x828] sm:$0xff]  ;;  %v416_v55 = vld [vmem:[#allocation2 + $0x8b0] sm:$0xff] }
  0x98   :  { %817 = vmatpush.msrb.mxu2 %v366_v56  ;;  %836 = vmatpush.msrb.mxu3 %v383_v57  ;;  %v431_v56 = vld [vmem:[#allocation2 + $0x928] sm:$0xff]  ;;  %v448_v57 = vld [vmem:[#allocation2 + $0x9b0] sm:$0xff] }
  0x99   :  { %778 = vmatpush.msrb.mxu0 %v333_v58  ;;  %797 = vmatpush.msrb.mxu1 %v350_v59  ;;  %v398_v58 = vld [vmem:[#allocation2 + $0x820] sm:$0xff]  ;;  %v415_v59 = vld [vmem:[#allocation2 + $0x8a8] sm:$0xff] }
  0x9a   :  { %818 = vmatpush.msrb.mxu2 %v365_v60  ;;  %837 = vmatpush.msrb.mxu3 %v382_v61  ;;  %v430_v60 = vld [vmem:[#allocation2 + $0x920] sm:$0xff]  ;;  %v447_v61 = vld [vmem:[#allocation2 + $0x9a8] sm:$0xff] }
  0x9b   :  { %779 = vmatpush.msrb.mxu0 %v332_v62  ;;  %798 = vmatpush.msrb.mxu1 %v349_v63  ;;  %v397_v62 = vld [vmem:[#allocation2 + $0x818] sm:$0xff]  ;;  %v414_v63 = vld [vmem:[#allocation2 + $0x8a0] sm:$0xff] }
  0x9c   :  { %819 = vmatpush.msrb.mxu2 %v364_v0  ;;  %838 = vmatpush.msrb.mxu3 %v381_v1  ;;  %v429_v0 = vld [vmem:[#allocation2 + $0x918] sm:$0xff]  ;;  %v446_v1 = vld [vmem:[#allocation2 + $0x9a0] sm:$0xff] }
  0x9d   :  { %780 = vmatpush.msrb.mxu0 %v331_v2  ;;  %799 = vmatpush.msrb.mxu1 %v348_v3  ;;  %v396_v2 = vld [vmem:[#allocation2 + $0x810] sm:$0xff]  ;;  %v413_v3 = vld [vmem:[#allocation2 + $0x898] sm:$0xff] }
  0x9e   :  { %820 = vmatpush.msrb.mxu2 %v363_v4  ;;  %839 = vmatpush.msrb.mxu3 %v380_v5  ;;  %v428_v4 = vld [vmem:[#allocation2 + $0x910] sm:$0xff]  ;;  %v445_v5 = vld [vmem:[#allocation2 + $0x998] sm:$0xff] }
  0x9f   :  { %781 = vmatpush.msrb.mxu0 %v330_v6  ;;  %800 = vmatpush.msrb.mxu1 %v347_v7  ;;  %v395_v6 = vld [vmem:[#allocation2 + $0x808] sm:$0xff]  ;;  %v412_v7 = vld [vmem:[#allocation2 + $0x890] sm:$0xff] }
  0xa0   :  { %821 = vmatpush.msrb.mxu2 %v362_v8  ;;  %840 = vmatpush.msrb.mxu3 %v379_v9  ;;  %v427_v8 = vld [vmem:[#allocation2 + $0x908] sm:$0xff]  ;;  %v444_v9 = vld [vmem:[#allocation2 + $0x990] sm:$0xff] }
  0xa1   :  { %782 = vmatmul.f32.vlgmr.msrb.gmra.mxu0 %v126_v10  ;;  %822 = vmatmul.f32.vlgmr.msrb.gmra.mxu2 %v128_v11  ;;  %v394_v10 = vld [vmem:[#allocation2 + $0x800] sm:$0xff]  ;;  %v411_v11 = vld [vmem:[#allocation2 + $0x888] sm:$0xff] }
  0xa2   :  { %846 = vmatpush.msra.mxu0 %v409_v12  ;;  %886 = vmatpush.msra.mxu2 %v441_v13  ;;  %v426_v12 = vld [vmem:[#allocation2 + $0x900] sm:$0xff]  ;;  %v443_v13 = vld [vmem:[#allocation2 + $0x988] sm:$0xff] }
  0xa3   :  { %801 = vmatpush.msrb.mxu1 %v346_v14  ;;  %841 = vmatpush.msrb.mxu3 %v378_v15  ;;  %v130_v14 = vld [vmem:[%s1405_s0 + $0x80] sm:$0xff]  ;;  %v132_v15 = vld [vmem:[%s1405_s0 + $0x90] sm:$0xff] }
  0xa4   :  { %802 = vmatmul.f32.vlgmr.msrb.gmra.mxu1 %v127_v16  ;;  %842 = vmatmul.f32.vlgmr.msrb.gmra.mxu3 %v129_v17  ;;  %v473_v16 = vld [vmem:[#allocation2 + $0xa78] sm:$0xff] }
  0xa5   :  { %847 = vmatpush.msra.mxu0 %v408_v18  ;;  %866 = vmatpush.msra.mxu1 %v425_v19  ;;  %v505_v17 = vld [vmem:[#allocation2 + $0xb78] sm:$0xff]  ;;  %v410_v18 = vld [vmem:[#allocation2 + $0x880] sm:$0xff] }
  0xa6   :  { %887 = vmatpush.msra.mxu2 %v440_v20  ;;  %906 = vmatpush.msra.mxu3 %v457_v21  ;;  %v442_v19 = vld [vmem:[#allocation2 + $0x980] sm:$0xff]  ;;  %v131_v20 = vld [vmem:[%s1405_s0 + $0x88] sm:$0xff]  ;;  %v133_v21 = vld [vmem:[%s1405_s0 + $0x98] sm:$0xff] }
  0xa7   :  { %848 = vmatpush.msra.mxu0 %v407_v22  ;;  %867 = vmatpush.msra.mxu1 %v424_v23  ;;  %v472_v22 = vld [vmem:[#allocation2 + $0xa70] sm:$0xff]  ;;  %v489_v23 = vld [vmem:[#allocation2 + $0xaf8] sm:$0xff] }
  0xa8   :  { %888 = vmatpush.msra.mxu2 %v439_v24  ;;  %907 = vmatpush.msra.mxu3 %v456_v25  ;;  %v504_v24 = vld [vmem:[#allocation2 + $0xb70] sm:$0xff]  ;;  %v521_v25 = vld [vmem:[#allocation2 + $0xbf8] sm:$0xff] }
  0xa9   :  { %849 = vmatpush.msra.mxu0 %v406_v26  ;;  %868 = vmatpush.msra.mxu1 %v423_v27  ;;  %v471_v26 = vld [vmem:[#allocation2 + $0xa68] sm:$0xff]  ;;  %v488_v27 = vld [vmem:[#allocation2 + $0xaf0] sm:$0xff] }
  0xaa   :  { %889 = vmatpush.msra.mxu2 %v438_v28  ;;  %908 = vmatpush.msra.mxu3 %v455_v29  ;;  %v503_v28 = vld [vmem:[#allocation2 + $0xb68] sm:$0xff]  ;;  %v520_v29 = vld [vmem:[#allocation2 + $0xbf0] sm:$0xff] }
  0xab   :  { %850 = vmatpush.msra.mxu0 %v405_v30  ;;  %869 = vmatpush.msra.mxu1 %v422_v31  ;;  %v470_v30 = vld [vmem:[#allocation2 + $0xa60] sm:$0xff]  ;;  %v487_v31 = vld [vmem:[#allocation2 + $0xae8] sm:$0xff] }
  0xac   :  { %890 = vmatpush.msra.mxu2 %v437_v32  ;;  %909 = vmatpush.msra.mxu3 %v454_v33  ;;  %v502_v32 = vld [vmem:[#allocation2 + $0xb60] sm:$0xff]  ;;  %v519_v33 = vld [vmem:[#allocation2 + $0xbe8] sm:$0xff] }
  0xad   :  { %851 = vmatpush.msra.mxu0 %v404_v34  ;;  %870 = vmatpush.msra.mxu1 %v421_v35  ;;  %v469_v34 = vld [vmem:[#allocation2 + $0xa58] sm:$0xff]  ;;  %v486_v35 = vld [vmem:[#allocation2 + $0xae0] sm:$0xff] }
  0xae   :  { %891 = vmatpush.msra.mxu2 %v436_v36  ;;  %910 = vmatpush.msra.mxu3 %v453_v37  ;;  %v501_v36 = vld [vmem:[#allocation2 + $0xb58] sm:$0xff]  ;;  %v518_v37 = vld [vmem:[#allocation2 + $0xbe0] sm:$0xff] }
  0xaf   :  { %852 = vmatpush.msra.mxu0 %v403_v38  ;;  %871 = vmatpush.msra.mxu1 %v420_v39  ;;  %v468_v38 = vld [vmem:[#allocation2 + $0xa50] sm:$0xff]  ;;  %v485_v39 = vld [vmem:[#allocation2 + $0xad8] sm:$0xff] }
  0xb0   :  { %892 = vmatpush.msra.mxu2 %v435_v40  ;;  %911 = vmatpush.msra.mxu3 %v452_v41  ;;  %v500_v40 = vld [vmem:[#allocation2 + $0xb50] sm:$0xff]  ;;  %v517_v41 = vld [vmem:[#allocation2 + $0xbd8] sm:$0xff] }
  0xb1   :  { %853 = vmatpush.msra.mxu0 %v402_v42  ;;  %872 = vmatpush.msra.mxu1 %v419_v43  ;;  %v467_v42 = vld [vmem:[#allocation2 + $0xa48] sm:$0xff]  ;;  %v484_v43 = vld [vmem:[#allocation2 + $0xad0] sm:$0xff] }
  0xb2   :  { %893 = vmatpush.msra.mxu2 %v434_v44  ;;  %912 = vmatpush.msra.mxu3 %v451_v45  ;;  %v499_v44 = vld [vmem:[#allocation2 + $0xb48] sm:$0xff]  ;;  %v516_v45 = vld [vmem:[#allocation2 + $0xbd0] sm:$0xff] }
  0xb3   :  { %854 = vmatpush.msra.mxu0 %v401_v46  ;;  %873 = vmatpush.msra.mxu1 %v418_v47  ;;  %v466_v46 = vld [vmem:[#allocation2 + $0xa40] sm:$0xff]  ;;  %v483_v47 = vld [vmem:[#allocation2 + $0xac8] sm:$0xff] }
  0xb4   :  { %894 = vmatpush.msra.mxu2 %v433_v48  ;;  %913 = vmatpush.msra.mxu3 %v450_v49  ;;  %v498_v48 = vld [vmem:[#allocation2 + $0xb40] sm:$0xff]  ;;  %v515_v49 = vld [vmem:[#allocation2 + $0xbc8] sm:$0xff] }
  0xb5   :  { %855 = vmatpush.msra.mxu0 %v400_v50  ;;  %874 = vmatpush.msra.mxu1 %v417_v51  ;;  %v465_v50 = vld [vmem:[#allocation2 + $0xa38] sm:$0xff]  ;;  %v482_v51 = vld [vmem:[#allocation2 + $0xac0] sm:$0xff] }
  0xb6   :  { %895 = vmatpush.msra.mxu2 %v432_v52  ;;  %914 = vmatpush.msra.mxu3 %v449_v53  ;;  %v497_v52 = vld [vmem:[#allocation2 + $0xb38] sm:$0xff]  ;;  %v514_v53 = vld [vmem:[#allocation2 + $0xbc0] sm:$0xff] }
  0xb7   :  { %856 = vmatpush.msra.mxu0 %v399_v54  ;;  %875 = vmatpush.msra.mxu1 %v416_v55  ;;  %v464_v54 = vld [vmem:[#allocation2 + $0xa30] sm:$0xff]  ;;  %v481_v55 = vld [vmem:[#allocation2 + $0xab8] sm:$0xff] }
  0xb8   :  { %896 = vmatpush.msra.mxu2 %v431_v56  ;;  %915 = vmatpush.msra.mxu3 %v448_v57  ;;  %v496_v56 = vld [vmem:[#allocation2 + $0xb30] sm:$0xff]  ;;  %v513_v57 = vld [vmem:[#allocation2 + $0xbb8] sm:$0xff] }
  0xb9   :  { %857 = vmatpush.msra.mxu0 %v398_v58  ;;  %876 = vmatpush.msra.mxu1 %v415_v59  ;;  %v463_v58 = vld [vmem:[#allocation2 + $0xa28] sm:$0xff]  ;;  %v480_v59 = vld [vmem:[#allocation2 + $0xab0] sm:$0xff] }
  0xba   :  { %897 = vmatpush.msra.mxu2 %v430_v60  ;;  %916 = vmatpush.msra.mxu3 %v447_v61  ;;  %v495_v60 = vld [vmem:[#allocation2 + $0xb28] sm:$0xff]  ;;  %v512_v61 = vld [vmem:[#allocation2 + $0xbb0] sm:$0xff] }
  0xbb   :  { %858 = vmatpush.msra.mxu0 %v397_v62  ;;  %877 = vmatpush.msra.mxu1 %v414_v63  ;;  %v462_v62 = vld [vmem:[#allocation2 + $0xa20] sm:$0xff]  ;;  %v479_v63 = vld [vmem:[#allocation2 + $0xaa8] sm:$0xff] }
  0xbc   :  { %898 = vmatpush.msra.mxu2 %v429_v0  ;;  %917 = vmatpush.msra.mxu3 %v446_v1  ;;  %v494_v0 = vld [vmem:[#allocation2 + $0xb20] sm:$0xff]  ;;  %v511_v1 = vld [vmem:[#allocation2 + $0xba8] sm:$0xff] }
  0xbd   :  { %859 = vmatpush.msra.mxu0 %v396_v2  ;;  %878 = vmatpush.msra.mxu1 %v413_v3  ;;  %v461_v2 = vld [vmem:[#allocation2 + $0xa18] sm:$0xff]  ;;  %v478_v3 = vld [vmem:[#allocation2 + $0xaa0] sm:$0xff] }
  0xbe   :  { %899 = vmatpush.msra.mxu2 %v428_v4  ;;  %918 = vmatpush.msra.mxu3 %v445_v5  ;;  %v493_v4 = vld [vmem:[#allocation2 + $0xb18] sm:$0xff]  ;;  %v510_v5 = vld [vmem:[#allocation2 + $0xba0] sm:$0xff] }
  0xbf   :  { %860 = vmatpush.msra.mxu0 %v395_v6  ;;  %879 = vmatpush.msra.mxu1 %v412_v7  ;;  %v460_v6 = vld [vmem:[#allocation2 + $0xa10] sm:$0xff]  ;;  %v477_v7 = vld [vmem:[#allocation2 + $0xa98] sm:$0xff] }
  0xc0   :  { %900 = vmatpush.msra.mxu2 %v427_v8  ;;  %919 = vmatpush.msra.mxu3 %v444_v9  ;;  %v492_v8 = vld [vmem:[#allocation2 + $0xb10] sm:$0xff]  ;;  %v509_v9 = vld [vmem:[#allocation2 + $0xb98] sm:$0xff] }
  0xc1   :  { %861 = vmatpush.msra.mxu0 %v394_v10  ;;  %880 = vmatpush.msra.mxu1 %v411_v11  ;;  %v459_v10 = vld [vmem:[#allocation2 + $0xa08] sm:$0xff]  ;;  %v476_v11 = vld [vmem:[#allocation2 + $0xa90] sm:$0xff] }
  0xc2   :  { %901 = vmatpush.msra.mxu2 %v426_v12  ;;  %920 = vmatpush.msra.mxu3 %v443_v13  ;;  %v491_v12 = vld [vmem:[#allocation2 + $0xb08] sm:$0xff]  ;;  %v508_v13 = vld [vmem:[#allocation2 + $0xb90] sm:$0xff] }
  0xc3   :  { %862 = vmatmul.f32.vlgmr.msra.gmra.mxu0 %v130_v14  ;;  %902 = vmatmul.f32.vlgmr.msra.gmra.mxu2 %v132_v15  ;;  %v458_v14 = vld [vmem:[#allocation2 + $0xa00] sm:$0xff]  ;;  %v475_v15 = vld [vmem:[#allocation2 + $0xa88] sm:$0xff] }
  0xc4   :  { %926 = vmatpush.msrb.mxu0 %v473_v16  ;;  %966 = vmatpush.msrb.mxu2 %v505_v17  ;;  %v490_v16 = vld [vmem:[#allocation2 + $0xb00] sm:$0xff]  ;;  %v507_v17 = vld [vmem:[#allocation2 + $0xb88] sm:$0xff] }
  0xc5   :  { %881 = vmatpush.msra.mxu1 %v410_v18  ;;  %921 = vmatpush.msra.mxu3 %v442_v19  ;;  %v134_v18 = vld [vmem:[%s1405_s0 + $0xa0] sm:$0xff]  ;;  %v136_v19 = vld [vmem:[%s1405_s0 + $0xb0] sm:$0xff] }
  0xc6   :  { %882 = vmatmul.f32.vlgmr.msra.gmra.mxu1 %v131_v20  ;;  %922 = vmatmul.f32.vlgmr.msra.gmra.mxu3 %v133_v21  ;;  %v474_v20 = vld [vmem:[#allocation2 + $0xa80] sm:$0xff] }
  0xc7   :  { %927 = vmatpush.msrb.mxu0 %v472_v22  ;;  %946 = vmatpush.msrb.mxu1 %v489_v23  ;;  %v506_v21 = vld [vmem:[#allocation2 + $0xb80] sm:$0xff]  ;;  %v135_v22 = vld [vmem:[%s1405_s0 + $0xa8] sm:$0xff]  ;;  %v137_v23 = vld [vmem:[%s1405_s0 + $0xb8] sm:$0xff] }
  0xc8   :  { %967 = vmatpush.msrb.mxu2 %v504_v24  ;;  %986 = vmatpush.msrb.mxu3 %v521_v25  ;;  %v1105_v24 = vld [vmem:[#allocation4] ss:$0 sm:$0xff] }
  0xc9   :  { %928 = vmatpush.msrb.mxu0 %v471_v26  ;;  %947 = vmatpush.msrb.mxu1 %v488_v27 }
  0xca   :  { %968 = vmatpush.msrb.mxu2 %v503_v28  ;;  %987 = vmatpush.msrb.mxu3 %v520_v29 }
  0xcb   :  { %929 = vmatpush.msrb.mxu0 %v470_v30  ;;  %948 = vmatpush.msrb.mxu1 %v487_v31 }
  0xcc   :  { %969 = vmatpush.msrb.mxu2 %v502_v32  ;;  %988 = vmatpush.msrb.mxu3 %v519_v33  ;;  %v1022_v32 = vld [vmem:[#allocation6 + $0x78] sm:$0xff]  ;;  %v1021_v33 = vld [vmem:[#allocation6 + $0x70] sm:$0xff] }
  0xcd   :  { %930 = vmatpush.msrb.mxu0 %v469_v34  ;;  %949 = vmatpush.msrb.mxu1 %v486_v35  ;;  %v1020_v34 = vld [vmem:[#allocation6 + $0x68] sm:$0xff] }
  0xce   :  { %970 = vmatpush.msrb.mxu2 %v501_v36  ;;  %989 = vmatpush.msrb.mxu3 %v518_v37  ;;  %v1019_v37 = vld [vmem:[#allocation6 + $0x60] sm:$0xff] }
  0xcf   :  { %931 = vmatpush.msrb.mxu0 %v468_v38  ;;  %950 = vmatpush.msrb.mxu1 %v485_v39  ;;  %v1018_v38 = vld [vmem:[#allocation6 + $0x58] sm:$0xff] }
  0xd0   :  { %971 = vmatpush.msrb.mxu2 %v500_v40  ;;  %990 = vmatpush.msrb.mxu3 %v517_v41  ;;  %v1017_v41 = vld [vmem:[#allocation6 + $0x50] sm:$0xff] }
  0xd1   :  { %932 = vmatpush.msrb.mxu0 %v467_v42  ;;  %951 = vmatpush.msrb.mxu1 %v484_v43  ;;  %v1016_v42 = vld [vmem:[#allocation6 + $0x48] sm:$0xff] }
  0xd2   :  { %972 = vmatpush.msrb.mxu2 %v499_v44  ;;  %991 = vmatpush.msrb.mxu3 %v516_v45 }
  0xd3   :  { %933 = vmatpush.msrb.mxu0 %v466_v46  ;;  %952 = vmatpush.msrb.mxu1 %v483_v47 }
  0xd4   :  { %973 = vmatpush.msrb.mxu2 %v498_v48  ;;  %992 = vmatpush.msrb.mxu3 %v515_v49 }
  0xd5   :  { %934 = vmatpush.msrb.mxu0 %v465_v50  ;;  %953 = vmatpush.msrb.mxu1 %v482_v51 }
  0xd6   :  { %974 = vmatpush.msrb.mxu2 %v497_v52  ;;  %993 = vmatpush.msrb.mxu3 %v514_v53  ;;  %v1015_v52 = vld [vmem:[#allocation6 + $0x40] sm:$0xff] }
  0xd7   :  { %935 = vmatpush.msrb.mxu0 %v464_v54  ;;  %954 = vmatpush.msrb.mxu1 %v481_v55  ;;  %v1014_v54 = vld [vmem:[#allocation6 + $0x38] sm:$0xff] }
  0xd8   :  { %975 = vmatpush.msrb.mxu2 %v496_v56  ;;  %994 = vmatpush.msrb.mxu3 %v513_v57  ;;  %v543_v25 = vpop.f32.mrf.mxu0  ;;  %v1013_v56 = vld [vmem:[#allocation6 + $0x30] sm:$0xff] }
  0xd9   :  { %936 = vmatpush.msrb.mxu0 %v463_v58  ;;  %955 = vmatpush.msrb.mxu1 %v480_v59  ;;  %v544_v26 = vadd.f32 %v1105_v24, %v543_v25  ;;  %v1012_v59 = vld [vmem:[#allocation6 + $0x28] sm:$0xff] }
  0xda   :  { %976 = vmatpush.msrb.mxu2 %v495_v60  ;;  %995 = vmatpush.msrb.mxu3 %v512_v61  ;;  %v1011_v61 = vld [vmem:[#allocation6 + $0x20] sm:$0xff] }
  0xdb   :  { %937 = vmatpush.msrb.mxu0 %v462_v62  ;;  %956 = vmatpush.msrb.mxu1 %v479_v63  ;;  %v563_v27 = vpop.f32.mrf.mxu1 }
  0xdc   :  { %977 = vmatpush.msrb.mxu2 %v494_v0  ;;  %996 = vmatpush.msrb.mxu3 %v511_v1  ;;  %v564_v28 = vadd.f32 %v563_v27, %v544_v26  ;;  %v1010_v0 = vld [vmem:[#allocation6 + $0x18] sm:$0xff]  ;;  %v1009_v1 = vld [vmem:[#allocation6 + $0x10] sm:$0xff] }
  0xdd   :  { %938 = vmatpush.msrb.mxu0 %v461_v2  ;;  %957 = vmatpush.msrb.mxu1 %v478_v3  ;;  %v1008_v3 = vld [vmem:[#allocation6 + $0x8] sm:$0xff]  ;;  %v1055_v26 = vld [vmem:[#allocation9 + $0x38] sm:$0xff] }
  0xde   :  { %978 = vmatpush.msrb.mxu2 %v493_v4  ;;  %997 = vmatpush.msrb.mxu3 %v510_v5  ;;  %v583_v29 = vpop.f32.mrf.mxu2  ;;  %v1007_v5 = vld [vmem:[#allocation6] sm:$0xff] }
  0xdf   :  { %939 = vmatpush.msrb.mxu0 %v460_v6  ;;  %958 = vmatpush.msrb.mxu1 %v477_v7  ;;  %v584_v30 = vadd.f32 %v583_v29, %v564_v28  ;;  %v1054_v29 = vld [vmem:[#allocation9 + $0x30] sm:$0xff] }
  0xe0   :  { %979 = vmatpush.msrb.mxu2 %v492_v8  ;;  %998 = vmatpush.msrb.mxu3 %v509_v9  ;;  %v1063_v9 = vld [vmem:[#allocation9 + $0x78] sm:$0xff] }
  0xe1   :  { %940 = vmatpush.msrb.mxu0 %v459_v10  ;;  %959 = vmatpush.msrb.mxu1 %v476_v11  ;;  %v603_v31 = vpop.f32.mrf.mxu3  ;;  %v1062_v10 = vld [vmem:[#allocation9 + $0x70] sm:$0xff] }
  0xe2   :  { %980 = vmatpush.msrb.mxu2 %v491_v12  ;;  %999 = vmatpush.msrb.mxu3 %v508_v13  ;;  %v604_v35 = vadd.f32 %v603_v31, %v584_v30  ;;  %v1061_v12 = vld [vmem:[#allocation9 + $0x68] sm:$0xff] }
  0xe3   :  { %941 = vmatpush.msrb.mxu0 %v458_v14  ;;  %960 = vmatpush.msrb.mxu1 %v475_v15  ;;  %v1060_v15 = vld [vmem:[#allocation9 + $0x60] sm:$0xff]  ;;  %v1053_v30 = vld [vmem:[#allocation9 + $0x28] sm:$0xff] }
  0xe4   :  { %981 = vmatpush.msrb.mxu2 %v490_v16  ;;  %1000 = vmatpush.msrb.mxu3 %v507_v17  ;;  %v623_v36 = vpop.f32.mrf.mxu0  ;;  %v1059_v17 = vld [vmem:[#allocation9 + $0x58] sm:$0xff] }
  0xe5   :  { %942 = vmatmul.f32.vlgmr.msrb.gmra.mxu0 %v134_v18  ;;  %982 = vmatmul.f32.vlgmr.msrb.gmra.mxu2 %v136_v19  ;;  %v624_v39 = vadd.f32 %v623_v36, %v604_v35  ;;  %v1058_v19 = vld [vmem:[#allocation9 + $0x50] sm:$0xff] }
  0xe6   :  { %961 = vmatpush.msrb.mxu1 %v474_v20  ;;  %1001 = vmatpush.msrb.mxu3 %v506_v21 }
  0xe7   :  { %962 = vmatmul.f32.vlgmr.msrb.gmra.mxu1 %v135_v22  ;;  %1002 = vmatmul.f32.vlgmr.msrb.gmra.mxu3 %v137_v23  ;;  %v643_v40 = vpop.f32.mrf.mxu1  ;;  %v1057_v22 = vld [vmem:[#allocation9 + $0x48] sm:$0xff]  ;;  %v1056_v23 = vld [vmem:[#allocation9 + $0x40] sm:$0xff] }
  0xe8   :  { %1027 = vmatpush.msra.mxu0 %v1022_v32  ;;  %v644_v43 = vadd.f32 %v643_v40, %v624_v39  ;;  %v663_v44 = vpop.f32.mrf.mxu2  ;;  %1068 = vmatpush.msra.mxu1 %v1063_v9  ;;  %v1050_v39 = vld [vmem:[#allocation9 + $0x10] sm:$0xff]  ;;  %v1049_v40 = vld [vmem:[#allocation9 + $0x8] sm:$0xff] }
  0xea   :  { %1028 = vmatpush.msra.mxu0 %v1021_v33  ;;  %v664_v45 = vadd.f32 %v663_v44, %v644_v43  ;;  %1069 = vmatpush.msra.mxu1 %v1062_v10 }
  0xeb   :  { %v683_v46 = vpop.f32.mrf.mxu3 }
  0xec   :  { %1029 = vmatpush.msra.mxu0 %v1020_v34  ;;  %v684_v48 = vadd.f32 %v683_v46, %v664_v45  ;;  %1070 = vmatpush.msra.mxu1 %v1061_v12  ;;  %v1107_v46 = vld [vmem:[#allocation10] ss:$0 sm:$0xff] }
  0xee   :  { %1030 = vmatpush.msra.mxu0 %v1019_v37  ;;  %1071 = vmatpush.msra.mxu1 %v1060_v15  ;;  %v1052_v37 = vld [vmem:[#allocation9 + $0x20] sm:$0xff] }
  0xf0   :  { %1031 = vmatpush.msra.mxu0 %v1018_v38  ;;  %1072 = vmatpush.msra.mxu1 %v1059_v17  ;;  %v1051_v38 = vld [vmem:[#allocation9 + $0x18] sm:$0xff] }
  0xf2   :  { %1032 = vmatpush.msra.mxu0 %v1017_v41  ;;  %1073 = vmatpush.msra.mxu1 %v1058_v19  ;;  %v1048_v41 = vld [vmem:[#allocation9] sm:$0xff] }
  0xf4   :  { %1033 = vmatpush.msra.mxu0 %v1016_v42  ;;  %1074 = vmatpush.msra.mxu1 %v1057_v22  ;;  %v1106_v42 = vld [vmem:[#allocation7] ss:$0 sm:$0xff] }
  0xf6   :  { %1034 = vmatpush.msra.mxu0 %v1015_v52  ;;  %1075 = vmatpush.msra.mxu1 %v1056_v23 }
  0xf8   :  { %1035 = vmatpush.msra.mxu0 %v1014_v54  ;;  %1076 = vmatpush.msra.mxu1 %v1055_v26 }
  0xfa   :  { %1036 = vmatpush.msra.mxu0 %v1013_v56  ;;  %1077 = vmatpush.msra.mxu1 %v1054_v29 }
  0xfc   :  { %v703_v47 = vpop.f32.mrf.mxu0  ;;  %1037 = vmatpush.msra.mxu0 %v1012_v59  ;;  %1078 = vmatpush.msra.mxu1 %v1053_v30 }
  0xfd   :  { %v704_v49 = vadd.f32 %v703_v47, %v684_v48 }
  0xfe   :  { %1038 = vmatpush.msra.mxu0 %v1011_v61  ;;  %1079 = vmatpush.msra.mxu1 %v1052_v37 }
  0xff   :  { %v723_v50 = vpop.f32.mrf.mxu1 }
 0x100   :  { %v724_v53 = vadd.f32 %v723_v50, %v704_v49  ;;  %1039 = vmatpush.msra.mxu0 %v1010_v0  ;;  %1080 = vmatpush.msra.mxu1 %v1051_v38 }
 0x102   :  { %v743_v51 = vpop.f32.mrf.mxu2  ;;  %1040 = vmatpush.msra.mxu0 %v1009_v1  ;;  %1081 = vmatpush.msra.mxu1 %v1050_v39 }
 0x103   :  { %v744_v55 = vadd.f32 %v743_v51, %v724_v53 }
 0x104   :  { %1041 = vmatpush.msra.mxu0 %v1008_v3  ;;  %1082 = vmatpush.msra.mxu1 %v1049_v40 }
 0x105   :  { %v763_v57 = vpop.f32.mrf.mxu3 }
 0x106   :  { %v764_v60 = vadd.f32 %v763_v57, %v744_v55  ;;  %1042 = vmatpush.msra.mxu0 %v1007_v5  ;;  %1083 = vmatpush.msra.mxu1 %v1048_v41 }
 0x11e   :  { %v783_v58 = vpop.f32.mrf.mxu0 }
 0x11f   :  { %v784_v62 = vadd.f32 %v783_v58, %v764_v60 }
 0x121   :  { %v803_v63 = vpop.f32.mrf.mxu1 }
 0x122   :  { %v804_v4 = vadd.f32 %v803_v63, %v784_v62 }
 0x124   :  { %v823_v2 = vpop.f32.mrf.mxu2 }
 0x125   :  { %v824_v6 = vadd.f32 %v823_v2, %v804_v4 }
 0x127   :  { %v843_v7 = vpop.f32.mrf.mxu3 }
 0x128   :  { %v844_v11 = vadd.f32 %v843_v7, %v824_v6 }
 0x140   :  { %v863_v8 = vpop.f32.mrf.mxu0 }
 0x141   :  { %v864_v13 = vadd.f32 %v863_v8, %v844_v11 }
 0x143   :  { %v883_v14 = vpop.f32.mrf.mxu1 }
 0x144   :  { %v884_v18 = vadd.f32 %v883_v14, %v864_v13 }
 0x146   :  { %v903_v16 = vpop.f32.mrf.mxu2 }
 0x147   :  { %v904_v20 = vadd.f32 %v903_v16, %v884_v18 }
 0x149   :  { %v923_v21 = vpop.f32.mrf.mxu3 }
 0x14a   :  { %v924_v24 = vadd.f32 %v923_v21, %v904_v20 }
 0x162   :  { %v943_v25 = vpop.f32.mrf.mxu0 }
 0x163   :  { %v944_v27 = vadd.f32 %v943_v25, %v924_v24 }
 0x164   :  { %v963_v28 = vpop.f32.mrf.mxu1 }
 0x165   :  { %v964_v31 = vadd.f32 %v963_v28, %v944_v27 }
 0x168   :  { %v983_v32 = vpop.f32.mrf.mxu2 }
 0x169   :  { %v984_v33 = vadd.f32 %v983_v32, %v964_v31 }
 0x16a   :  { %v1003_v34 = vpop.f32.mrf.mxu3 }
 0x16b   :  { %v1004_v35 = vadd.f32 %v1003_v34, %v984_v33 }
 0x16d   :  { %1108 = vtanh.f32 %v1004_v35 }
 0x173   :  { %v1109_v36 = vpop.eup %1108 }
 0x174   :  { %1043 = vmatmul.f32.vlgmr.msra.gmra.mxu0 %v1109_v36 }
 0x1f1   :  { %v1044_v43 = vpop.f32.mrf.mxu0 }
 0x1f2   :  { %v1045_v44 = vadd.f32 %v1106_v42, %v1044_v43 }
 0x1f4   :  { %1110 = vtanh.f32 %v1045_v44 }
 0x1fa   :  { %v1111_v45 = vpop.eup %1110 }
 0x1fb   :  { %1084 = vmatmul.f32.vlgmr.msra.gmra.mxu1 %v1111_v45 }
 0x278   :  { %v1085_v47 = vpop.f32.mrf.mxu1 }
 0x279   :  { %v1086_v48 = vadd.f32 %v1107_v46, %v1085_v47 }
 0x27b   :  { %1088 = vst [vmem:[%s1412_s7] sm:$0xff] %v1086_v48 }
 0x27c   :  { %1093 = vsyncpa [#allocation3], 1 }
 0x27d   :  { %1094 = vsyncpa [#allocation5], 1 }
 0x27e   :  { %1095 = vsyncpa [#allocation8], 1 }
 0x27f   :  { %1096 = vsyncpa [#allocation11], 1 }

</bundles_post_ra>
